<compile_context>
chip_gen: v6e
topology: v6e:2x2x1
jax: 0.10.0
libtpu: 0.0.40
codegen_flags: <defaults>
</compile_context>

<pallas_src>
import jax
import jax.numpy as jnp
from jax.experimental import pallas as pl
from jax.experimental.pallas import tpu as pltpu


def _round_up(x: int, m: int) -> int:
    return ((x + m - 1) // m) * m


def bert_entity_encoder_head(hidden, pos1, pos2, W, b,
                             *, compute_dtype=jnp.bfloat16, tb=None):
    """Entity-pair head of BERTEntityEncoder.

    hidden: (B, L, H) float   BERT final hidden states
    pos1/pos2: (B, 1) int     head / tail entity start positions
    W: (2H, 2H), b: (2H,)     nn.Linear(2H, 2H) parameters
    returns (B, 2H) float32
    """
    B, L, H = hidden.shape
    H2 = 2 * H

    # ---- batch tile -------------------------------------------------------
    if tb is None:
        tb = min(128, _round_up(B, 8))
        # Prefer >= 2 grid steps so tile i+1's row gather has tile i's matmul
        # and writeback to hide behind.
        if B > 8 and _round_up(B, tb) == tb:
            tb = _round_up((B + 1) // 2, 8)
    assert tb % 8 == 0
    Bp = _round_up(B, tb)
    n_tiles = Bp // tb

    Hp = _round_up(H, 128)     # lane-align hidden dim (real BERT 768 is a no-op)
    H2p = _round_up(H2, 128)   # lane-dense output width

    cdt = compute_dtype

    # Fold the duplicated concat into the weight:
    #   concat([ent, ent]) @ W.T == ent @ (W.T[:H] + W.T[H:])
    Wt = W.astype(jnp.float32).T
    Wf = Wt[:H, :] + Wt[H:, :]                                          # (H, 2H)
    Wf_p = jnp.zeros((Hp, H2p), jnp.float32).at[:H, :H2].set(Wf).astype(cdt)
    b_p = jnp.zeros((1, H2p), jnp.float32).at[0, :H2].set(b.astype(jnp.float32))

    hidden_c = hidden.astype(cdt)
    if Hp != H:
        hidden_c = jnp.pad(hidden_c, ((0, 0), (0, 0), (0, Hp - H)))
    hidden2d = hidden_c.reshape(B * L, Hp)        # row (b, p) lives at b*L + p

    p1 = jnp.clip(pos1.reshape(-1).astype(jnp.int32), 0, L - 1)
    p2 = jnp.clip(pos2.reshape(-1).astype(jnp.int32), 0, L - 1)
    pos1_p = jnp.zeros((Bp,), jnp.int32).at[:B].set(p1)
    pos2_p = jnp.zeros((Bp,), jnp.int32).at[:B].set(p2)

    # scatter_ aliasing: the shared one-hot holds a single 1 when pos1 == pos2,
    # so the second gathered row must not double-count.  Vectorized fixup:
    #   ent = row(pos1) + row(pos2) * (pos1 != pos2)
    mask = jnp.zeros((Bp, 1), cdt).at[:B, 0].set((p1 != p2).astype(cdt))

    def kernel(pos1_ref, pos2_ref, hidden_hbm, mask_ref, wf_ref, b_ref,
               out_ref, rows1, rows2, sems):
        i = pl.program_id(0)
        nt = pl.num_programs(0)
        slot = i % 2

        # --- manual row gather, double-buffered across grid steps (P4) -----
        # INVARIANT: every copy on sems[slot, k] moves exactly one (1, Hp) row
        # of `cdt`, and every wait below describes the same size, so the shared
        # per-(slot, array) semaphores stay balanced.  Do not mix copy sizes.
        def start_gather(tile_idx, dst_slot):
            base = tile_idx * tb
            for r in range(tb):
                b_idx = base + r
                b_safe = jnp.minimum(b_idx, B - 1)   # padded rows reuse last real row
                r1 = b_safe * L + pos1_ref[b_idx]
                r2 = b_safe * L + pos2_ref[b_idx]
                pltpu.make_async_copy(
                    hidden_hbm.at[pl.ds(r1, 1), :],
                    rows1.at[dst_slot, pl.ds(r, 1), :],
                    sems.at[dst_slot, 0]).start()
                pltpu.make_async_copy(
                    hidden_hbm.at[pl.ds(r2, 1), :],
                    rows2.at[dst_slot, pl.ds(r, 1), :],
                    sems.at[dst_slot, 1]).start()

        def wait_gather(dst_slot):
            for r in range(tb):
                pltpu.make_async_copy(
                    hidden_hbm.at[pl.ds(0, 1), :],
                    rows1.at[dst_slot, pl.ds(r, 1), :],
                    sems.at[dst_slot, 0]).wait()
                pltpu.make_async_copy(
                    hidden_hbm.at[pl.ds(0, 1), :],
                    rows2.at[dst_slot, pl.ds(r, 1), :],
                    sems.at[dst_slot, 1]).wait()

        @pl.when(i == 0)
        def _():                         # prime: fetch tile 0 into slot 0
            start_gather(0, 0)

        @pl.when(i + 1 < nt)
        def _():                         # prefetch tile i+1 while tile i computes
            start_gather(i + 1, (i + 1) % 2)

        # All SMEM scalar reads above happen before any wait (keeps sst->sld
        # forwarding intact); nothing reads SMEM after this point.
        wait_gather(slot)

        # --- compute --------------------------------------------------------
        # head_hidden == tail_hidden == row(pos1) + row(pos2) * mask, in cdt.
        ent = rows1[slot] + rows2[slot] * mask_ref[...]            # (tb, Hp)
        acc = jnp.dot(ent, wf_ref[...],
                      preferred_element_type=jnp.float32)          # (tb, H2p) f32
        out_ref[...] = acc + b_ref[...]

    grid_spec = pltpu.PrefetchScalarGridSpec(
        num_scalar_prefetch=2,
        grid=(n_tiles,),
        in_specs=[
            pl.BlockSpec(memory_space=pl.ANY),                     # hidden: stays in HBM
            pl.BlockSpec((tb, 1), lambda i, p1, p2: (i, 0)),       # pos1==pos2 mask
            # TODO(synk): on v7x, pipeline_mode=pl.Buffered(1) on the two
            # resident operands below would drop their redundant second buffer.
            pl.BlockSpec((Hp, H2p), lambda i, p1, p2: (0, 0)),     # folded weight (resident)
            pl.BlockSpec((1, H2p), lambda i, p1, p2: (0, 0)),      # bias (resident)
        ],
        out_specs=pl.BlockSpec((tb, H2p), lambda i, p1, p2: (i, 0)),
        scratch_shapes=[
            pltpu.VMEM((2, tb, Hp), cdt),       # gathered pos1 rows, double-buffered
            pltpu.VMEM((2, tb, Hp), cdt),       # gathered pos2 rows, double-buffered
            pltpu.SemaphoreType.DMA((2, 2)),    # [buffer slot][rows1 | rows2]
        ],
    )

    out = pl.pallas_call(
        kernel,
        out_shape=jax.ShapeDtypeStruct((Bp, H2p), jnp.float32),
        grid_spec=grid_spec,
        compiler_params=pltpu.CompilerParams(
            # "arbitrary": the cross-step double buffer carries state between
            # consecutive grid steps, so the batch axis must run sequentially.
            # TODO(synk): a CORE_PARALLEL split for v7x needs per-core priming.
            dimension_semantics=("arbitrary",),
            vmem_limit_bytes=32 * 1024 * 1024,
        ),
    )(pos1_p, pos2_p, hidden2d, mask, Wf_p, b_p)

    return out[:B, :H2]


def reference(hidden, pos1, pos2, W, b):
    """Pure-JAX reference mirroring the PyTorch forward (incl. scatter_ aliasing)."""
    B, L, H = hidden.shape
    pos_idx = jnp.arange(L)[None, :]
    onehot = ((pos_idx == pos1) | (pos_idx == pos2)).astype(jnp.float32)
    ent = jnp.sum(onehot[:, :, None] * hidden, axis=1)
    x = jnp.concatenate([ent, ent], axis=1)
    return jnp.dot(x, W.T, precision=jax.lax.Precision.HIGHEST) + b


def _make_case(key, B, L, H, V=30):
    H2 = 2 * H
    k_emb, k_tok, k_w, k_b, k_p1, k_p2 = jax.random.split(key, 6)
    # --- deterministic BERT stand-in (glue, plain JAX) ---
    emb_table = jax.random.normal(k_emb, (V, H), dtype=jnp.float32) * 0.1
    token = jax.random.randint(k_tok, (B, L), 0, V, dtype=jnp.int32)
    att_mask = jnp.ones((B, L), dtype=jnp.int32).at[:, L - 2:].set(0)
    hidden = emb_table[token] * att_mask[:, :, None].astype(jnp.float32)   # (B, L, H)
    pos1 = jax.random.randint(k_p1, (B, 1), 0, L, dtype=jnp.int32)
    pos2 = jax.random.randint(k_p2, (B, 1), 0, L, dtype=jnp.int32)
    pos2 = pos2.at[0, 0].set(pos1[0, 0])       # exercise the pos1 == pos2 path
    # --- linear layer params (nn.Linear(2H, 2H)) ---
    W = jax.random.normal(k_w, (H2, H2), dtype=jnp.float32) * 0.05
    b = jax.random.normal(k_b, (H2,), dtype=jnp.float32) * 0.05
    return hidden, pos1, pos2, W, b


if __name__ == "__main__":
    key = jax.random.PRNGKey(0)
    k0, k1 = jax.random.split(key)

    # Case 1: small shapes consistent with the module (single grid step).
    hidden, pos1, pos2, W, b = _make_case(k0, B=2, L=8, H=32)
    ref = reference(hidden, pos1, pos2, W, b)

    out_f32 = jax.block_until_ready(
        bert_entity_encoder_head(hidden, pos1, pos2, W, b,
                                 compute_dtype=jnp.float32))
    assert out_f32.shape == ref.shape
    assert jnp.allclose(out_f32, ref, atol=1e-2, rtol=1e-2), \
        float(jnp.max(jnp.abs(out_f32 - ref)))

    out_bf16 = jax.block_until_ready(
        bert_entity_encoder_head(hidden, pos1, pos2, W, b))
    assert out_bf16.shape == ref.shape
    assert jnp.allclose(out_bf16, ref, atol=3e-2, rtol=3e-2), \
        float(jnp.max(jnp.abs(out_bf16 - ref)))

    # Case 2: multi-tile batch — exercises the cross-step prefetch path and
    # padded batch rows (B=24 -> tb=16, grid of 2 steps).
    hidden, pos1, pos2, W, b = _make_case(k1, B=24, L=16, H=32)
    ref = reference(hidden, pos1, pos2, W, b)
    out_mt = jax.block_until_ready(
        bert_entity_encoder_head(hidden, pos1, pos2, W, b,
                                 compute_dtype=jnp.float32))
    assert out_mt.shape == ref.shape
    assert jnp.allclose(out_mt, ref, atol=1e-2, rtol=1e-2), \
        float(jnp.max(jnp.abs(out_mt - ref)))

    print("KERNEL_OK")
</pallas_src>

<mosaic_0001>
module attributes {stable_mosaic.version = 11 : i64} {
  func.func @kernel(%arg0: i32, %arg1: memref<8xi32, #tpu.memory_space<smem>>, %arg2: memref<8xi32, #tpu.memory_space<smem>>, %arg3: memref<16x128xf32, #tpu.memory_space<any>>, %arg4: memref<8x1xf32, #tpu.memory_space<vmem>>, %arg5: memref<128x128xf32, #tpu.memory_space<vmem>>, %arg6: memref<1x128xf32, #tpu.memory_space<vmem>>, %arg7: memref<8x128xf32, #tpu.memory_space<vmem>>, %arg8: memref<2x8x128xf32, #tpu.memory_space<vmem>>, %arg9: memref<2x8x128xf32, #tpu.memory_space<vmem>>, %arg10: memref<2x2x!tpu.dma_semaphore, #tpu.memory_space<semaphore_mem>>) attributes {dimension_semantics = [#tpu.dimension_semantics<arbitrary>], iteration_bounds = array<i64: 1>, scalar_prefetch = 2 : i64, scratch_operands = 3 : i64, tpu.core_type = #tpu.core_type<tc>, window_params = [{}, {transform_indices = @transform_1, window_bounds = array<i64: 8, 1>}, {pipeline_mode = #tpu.pipeline_mode<synchronous>, transform_indices = @transform_2, window_bounds = array<i64: 128, 128>}, {pipeline_mode = #tpu.pipeline_mode<synchronous>, transform_indices = @transform_3, window_bounds = array<i64: 1, 128>}, {transform_indices = @transform_4, window_bounds = array<i64: 8, 128>}]} {
    %c2_i32 = arith.constant 2 : i32
    %c0_i32 = arith.constant 0 : i32
    %0 = arith.cmpi eq, %c2_i32, %c0_i32 : i32
    %c1_i32 = arith.constant 1 : i32
    %1 = arith.select %0, %c1_i32, %c2_i32 : i32
    %2 = arith.remsi %arg0, %1 : i32
    %c0_i32_0 = arith.constant 0 : i32
    %3 = arith.cmpi ne, %2, %c0_i32_0 : i32
    %c0_i32_1 = arith.constant 0 : i32
    %4 = arith.cmpi slt, %2, %c0_i32_1 : i32
    %c0_i32_2 = arith.constant 0 : i32
    %5 = arith.cmpi slt, %1, %c0_i32_2 : i32
    %6 = arith.xori %4, %5 : i1
    %7 = arith.andi %6, %3 : i1
    %8 = arith.addi %2, %1 : i32
    %9 = arith.select %7, %8, %2 : i32
    %c0_i32_3 = arith.constant 0 : i32
    %10 = arith.cmpi eq, %arg0, %c0_i32_3 : i32
    %11 = arith.extui %10 : i1 to i32
    %c0_i32_4 = arith.constant 0 : i32
    %12 = arith.cmpi ne, %11, %c0_i32_4 : i32
    scf.if %12 {
      %c0_i32_94 = arith.constant 0 : i32
      %c1_i32_95 = arith.constant 1 : i32
      %113 = arith.minsi %c0_i32_94, %c1_i32_95 : i32
      %c8_i32 = arith.constant 8 : i32
      %114 = arith.muli %113, %c8_i32 : i32
      %c0_96 = arith.constant 0 : index
      %115 = memref.load %arg1[%c0_96] : memref<8xi32, #tpu.memory_space<smem>>
      %116 = arith.addi %114, %115 : i32
      %c8_i32_97 = arith.constant 8 : i32
      %117 = arith.muli %113, %c8_i32_97 : i32
      %c0_98 = arith.constant 0 : index
      %118 = memref.load %arg2[%c0_98] : memref<8xi32, #tpu.memory_space<smem>>
      %119 = arith.addi %117, %118 : i32
      %c0_i32_99 = arith.constant 0 : i32
      %c0_i32_100 = arith.constant 0 : i32
      %c0_i32_101 = arith.constant 0 : i32
      %c0_i32_102 = arith.constant 0 : i32
      %120 = tpu.memref_slice %arg3[%116, %c0_i32_102] : memref<16x128xf32, #tpu.memory_space<any>> -> memref<1x128xf32, #tpu.memory_space<any>>
      %c0_i32_103 = arith.constant 0 : i32
      %c0_i32_104 = arith.constant 0 : i32
      %121 = tpu.memref_slice %arg8[%c0_i32_99, %c0_i32_103, %c0_i32_104] : memref<2x8x128xf32, #tpu.memory_space<vmem>> -> memref<1x1x128xf32, #tpu.memory_space<vmem>>
      %122 = tpu.memref_squeeze %121 : memref<1x1x128xf32, #tpu.memory_space<vmem>> -> memref<1x128xf32, #tpu.memory_space<vmem>>
      %123 = tpu.memref_slice %arg10[%c0_i32_100, %c0_i32_101] : memref<2x2x!tpu.dma_semaphore, #tpu.memory_space<semaphore_mem>> -> memref<1x1x!tpu.dma_semaphore, #tpu.memory_space<semaphore_mem>>
      %124 = tpu.memref_squeeze %123 : memref<1x1x!tpu.dma_semaphore, #tpu.memory_space<semaphore_mem>> -> memref<!tpu.dma_semaphore, #tpu.memory_space<semaphore_mem>>
      tpu.enqueue_dma source(%120 : memref<1x128xf32, #tpu.memory_space<any>>) target(%122 : memref<1x128xf32, #tpu.memory_space<vmem>>) target_semaphore(%124 : memref<!tpu.dma_semaphore, #tpu.memory_space<semaphore_mem>>)
      %c0_i32_105 = arith.constant 0 : i32
      %c0_i32_106 = arith.constant 0 : i32
      %c1_i32_107 = arith.constant 1 : i32
      %c0_i32_108 = arith.constant 0 : i32
      %125 = tpu.memref_slice %arg3[%119, %c0_i32_108] : memref<16x128xf32, #tpu.memory_space<any>> -> memref<1x128xf32, #tpu.memory_space<any>>
      %c0_i32_109 = arith.constant 0 : i32
      %c0_i32_110 = arith.constant 0 : i32
      %126 = tpu.memref_slice %arg9[%c0_i32_105, %c0_i32_109, %c0_i32_110] : memref<2x8x128xf32, #tpu.memory_space<vmem>> -> memref<1x1x128xf32, #tpu.memory_space<vmem>>
      %127 = tpu.memref_squeeze %126 : memref<1x1x128xf32, #tpu.memory_space<vmem>> -> memref<1x128xf32, #tpu.memory_space<vmem>>
      %128 = tpu.memref_slice %arg10[%c0_i32_106, %c1_i32_107] : memref<2x2x!tpu.dma_semaphore, #tpu.memory_space<semaphore_mem>> -> memref<1x1x!tpu.dma_semaphore, #tpu.memory_space<semaphore_mem>>
      %129 = tpu.memref_squeeze %128 : memref<1x1x!tpu.dma_semaphore, #tpu.memory_space<semaphore_mem>> -> memref<!tpu.dma_semaphore, #tpu.memory_space<semaphore_mem>>
      tpu.enqueue_dma source(%125 : memref<1x128xf32, #tpu.memory_space<any>>) target(%127 : memref<1x128xf32, #tpu.memory_space<vmem>>) target_semaphore(%129 : memref<!tpu.dma_semaphore, #tpu.memory_space<semaphore_mem>>)
      %c1_i32_111 = arith.constant 1 : i32
      %c1_i32_112 = arith.constant 1 : i32
      %130 = arith.minsi %c1_i32_111, %c1_i32_112 : i32
      %c8_i32_113 = arith.constant 8 : i32
      %131 = arith.muli %130, %c8_i32_113 : i32
      %c1 = arith.constant 1 : index
      %132 = memref.load %arg1[%c1] : memref<8xi32, #tpu.memory_space<smem>>
      %133 = arith.addi %131, %132 : i32
      %c8_i32_114 = arith.constant 8 : i32
      %134 = arith.muli %130, %c8_i32_114 : i32
      %c1_115 = arith.constant 1 : index
      %135 = memref.load %arg2[%c1_115] : memref<8xi32, #tpu.memory_space<smem>>
      %136 = arith.addi %134, %135 : i32
      %c0_i32_116 = arith.constant 0 : i32
      %c0_i32_117 = arith.constant 0 : i32
      %c0_i32_118 = arith.constant 0 : i32
      %c0_i32_119 = arith.constant 0 : i32
      %137 = tpu.memref_slice %arg3[%133, %c0_i32_119] : memref<16x128xf32, #tpu.memory_space<any>> -> memref<1x128xf32, #tpu.memory_space<any>>
      %c1_i32_120 = arith.constant 1 : i32
      %c0_i32_121 = arith.constant 0 : i32
      %138 = tpu.memref_slice %arg8[%c0_i32_116, %c1_i32_120, %c0_i32_121] : memref<2x8x128xf32, #tpu.memory_space<vmem>> -> memref<1x1x128xf32, #tpu.memory_space<vmem>>
      %139 = tpu.memref_squeeze %138 : memref<1x1x128xf32, #tpu.memory_space<vmem>> -> memref<1x128xf32, #tpu.memory_space<vmem>>
      %140 = tpu.memref_slice %arg10[%c0_i32_117, %c0_i32_118] : memref<2x2x!tpu.dma_semaphore, #tpu.memory_space<semaphore_mem>> -> memref<1x1x!tpu.dma_semaphore, #tpu.memory_space<semaphore_mem>>
      %141 = tpu.memref_squeeze %140 : memref<1x1x!tpu.dma_semaphore, #tpu.memory_space<semaphore_mem>> -> memref<!tpu.dma_semaphore, #tpu.memory_space<semaphore_mem>>
      tpu.enqueue_dma source(%137 : memref<1x128xf32, #tpu.memory_space<any>>) target(%139 : memref<1x128xf32, #tpu.memory_space<vmem>>) target_semaphore(%141 : memref<!tpu.dma_semaphore, #tpu.memory_space<semaphore_mem>>)
      %c0_i32_122 = arith.constant 0 : i32
      %c0_i32_123 = arith.constant 0 : i32
      %c1_i32_124 = arith.constant 1 : i32
      %c0_i32_125 = arith.constant 0 : i32
      %142 = tpu.memref_slice %arg3[%136, %c0_i32_125] : memref<16x128xf32, #tpu.memory_space<any>> -> memref<1x128xf32, #tpu.memory_space<any>>
      %c1_i32_126 = arith.constant 1 : i32
      %c0_i32_127 = arith.constant 0 : i32
      %143 = tpu.memref_slice %arg9[%c0_i32_122, %c1_i32_126, %c0_i32_127] : memref<2x8x128xf32, #tpu.memory_space<vmem>> -> memref<1x1x128xf32, #tpu.memory_space<vmem>>
      %144 = tpu.memref_squeeze %143 : memref<1x1x128xf32, #tpu.memory_space<vmem>> -> memref<1x128xf32, #tpu.memory_space<vmem>>
      %145 = tpu.memref_slice %arg10[%c0_i32_123, %c1_i32_124] : memref<2x2x!tpu.dma_semaphore, #tpu.memory_space<semaphore_mem>> -> memref<1x1x!tpu.dma_semaphore, #tpu.memory_space<semaphore_mem>>
      %146 = tpu.memref_squeeze %145 : memref<1x1x!tpu.dma_semaphore, #tpu.memory_space<semaphore_mem>> -> memref<!tpu.dma_semaphore, #tpu.memory_space<semaphore_mem>>
      tpu.enqueue_dma source(%142 : memref<1x128xf32, #tpu.memory_space<any>>) target(%144 : memref<1x128xf32, #tpu.memory_space<vmem>>) target_semaphore(%146 : memref<!tpu.dma_semaphore, #tpu.memory_space<semaphore_mem>>)
      %c2_i32_128 = arith.constant 2 : i32
      %c1_i32_129 = arith.constant 1 : i32
      %147 = arith.minsi %c2_i32_128, %c1_i32_129 : i32
      %c8_i32_130 = arith.constant 8 : i32
      %148 = arith.muli %147, %c8_i32_130 : i32
      %c2 = arith.constant 2 : index
      %149 = memref.load %arg1[%c2] : memref<8xi32, #tpu.memory_space<smem>>
      %150 = arith.addi %148, %149 : i32
      %c8_i32_131 = arith.constant 8 : i32
      %151 = arith.muli %147, %c8_i32_131 : i32
      %c2_132 = arith.constant 2 : index
      %152 = memref.load %arg2[%c2_132] : memref<8xi32, #tpu.memory_space<smem>>
      %153 = arith.addi %151, %152 : i32
      %c0_i32_133 = arith.constant 0 : i32
      %c0_i32_134 = arith.constant 0 : i32
      %c0_i32_135 = arith.constant 0 : i32
      %c0_i32_136 = arith.constant 0 : i32
      %154 = tpu.memref_slice %arg3[%150, %c0_i32_136] : memref<16x128xf32, #tpu.memory_space<any>> -> memref<1x128xf32, #tpu.memory_space<any>>
      %c2_i32_137 = arith.constant 2 : i32
      %c0_i32_138 = arith.constant 0 : i32
      %155 = tpu.memref_slice %arg8[%c0_i32_133, %c2_i32_137, %c0_i32_138] : memref<2x8x128xf32, #tpu.memory_space<vmem>> -> memref<1x1x128xf32, #tpu.memory_space<vmem>>
      %156 = tpu.memref_squeeze %155 : memref<1x1x128xf32, #tpu.memory_space<vmem>> -> memref<1x128xf32, #tpu.memory_space<vmem>>
      %157 = tpu.memref_slice %arg10[%c0_i32_134, %c0_i32_135] : memref<2x2x!tpu.dma_semaphore, #tpu.memory_space<semaphore_mem>> -> memref<1x1x!tpu.dma_semaphore, #tpu.memory_space<semaphore_mem>>
      %158 = tpu.memref_squeeze %157 : memref<1x1x!tpu.dma_semaphore, #tpu.memory_space<semaphore_mem>> -> memref<!tpu.dma_semaphore, #tpu.memory_space<semaphore_mem>>
      tpu.enqueue_dma source(%154 : memref<1x128xf32, #tpu.memory_space<any>>) target(%156 : memref<1x128xf32, #tpu.memory_space<vmem>>) target_semaphore(%158 : memref<!tpu.dma_semaphore, #tpu.memory_space<semaphore_mem>>)
      %c0_i32_139 = arith.constant 0 : i32
      %c0_i32_140 = arith.constant 0 : i32
      %c1_i32_141 = arith.constant 1 : i32
      %c0_i32_142 = arith.constant 0 : i32
      %159 = tpu.memref_slice %arg3[%153, %c0_i32_142] : memref<16x128xf32, #tpu.memory_space<any>> -> memref<1x128xf32, #tpu.memory_space<any>>
      %c2_i32_143 = arith.constant 2 : i32
      %c0_i32_144 = arith.constant 0 : i32
      %160 = tpu.memref_slice %arg9[%c0_i32_139, %c2_i32_143, %c0_i32_144] : memref<2x8x128xf32, #tpu.memory_space<vmem>> -> memref<1x1x128xf32, #tpu.memory_space<vmem>>
      %161 = tpu.memref_squeeze %160 : memref<1x1x128xf32, #tpu.memory_space<vmem>> -> memref<1x128xf32, #tpu.memory_space<vmem>>
      %162 = tpu.memref_slice %arg10[%c0_i32_140, %c1_i32_141] : memref<2x2x!tpu.dma_semaphore, #tpu.memory_space<semaphore_mem>> -> memref<1x1x!tpu.dma_semaphore, #tpu.memory_space<semaphore_mem>>
      %163 = tpu.memref_squeeze %162 : memref<1x1x!tpu.dma_semaphore, #tpu.memory_space<semaphore_mem>> -> memref<!tpu.dma_semaphore, #tpu.memory_space<semaphore_mem>>
      tpu.enqueue_dma source(%159 : memref<1x128xf32, #tpu.memory_space<any>>) target(%161 : memref<1x128xf32, #tpu.memory_space<vmem>>) target_semaphore(%163 : memref<!tpu.dma_semaphore, #tpu.memory_space<semaphore_mem>>)
      %c3_i32_145 = arith.constant 3 : i32
      %c1_i32_146 = arith.constant 1 : i32
      %164 = arith.minsi %c3_i32_145, %c1_i32_146 : i32
      %c8_i32_147 = arith.constant 8 : i32
      %165 = arith.muli %164, %c8_i32_147 : i32
      %c3 = arith.constant 3 : index
      %166 = memref.load %arg1[%c3] : memref<8xi32, #tpu.memory_space<smem>>
      %167 = arith.addi %165, %166 : i32
      %c8_i32_148 = arith.constant 8 : i32
      %168 = arith.muli %164, %c8_i32_148 : i32
      %c3_149 = arith.constant 3 : index
      %169 = memref.load %arg2[%c3_149] : memref<8xi32, #tpu.memory_space<smem>>
      %170 = arith.addi %168, %169 : i32
      %c0_i32_150 = arith.constant 0 : i32
      %c0_i32_151 = arith.constant 0 : i32
      %c0_i32_152 = arith.constant 0 : i32
      %c0_i32_153 = arith.constant 0 : i32
      %171 = tpu.memref_slice %arg3[%167, %c0_i32_153] : memref<16x128xf32, #tpu.memory_space<any>> -> memref<1x128xf32, #tpu.memory_space<any>>
      %c3_i32_154 = arith.constant 3 : i32
      %c0_i32_155 = arith.constant 0 : i32
      %172 = tpu.memref_slice %arg8[%c0_i32_150, %c3_i32_154, %c0_i32_155] : memref<2x8x128xf32, #tpu.memory_space<vmem>> -> memref<1x1x128xf32, #tpu.memory_space<vmem>>
      %173 = tpu.memref_squeeze %172 : memref<1x1x128xf32, #tpu.memory_space<vmem>> -> memref<1x128xf32, #tpu.memory_space<vmem>>
      %174 = tpu.memref_slice %arg10[%c0_i32_151, %c0_i32_152] : memref<2x2x!tpu.dma_semaphore, #tpu.memory_space<semaphore_mem>> -> memref<1x1x!tpu.dma_semaphore, #tpu.memory_space<semaphore_mem>>
      %175 = tpu.memref_squeeze %174 : memref<1x1x!tpu.dma_semaphore, #tpu.memory_space<semaphore_mem>> -> memref<!tpu.dma_semaphore, #tpu.memory_space<semaphore_mem>>
      tpu.enqueue_dma source(%171 : memref<1x128xf32, #tpu.memory_space<any>>) target(%173 : memref<1x128xf32, #tpu.memory_space<vmem>>) target_semaphore(%175 : memref<!tpu.dma_semaphore, #tpu.memory_space<semaphore_mem>>)
      %c0_i32_156 = arith.constant 0 : i32
      %c0_i32_157 = arith.constant 0 : i32
      %c1_i32_158 = arith.constant 1 : i32
      %c0_i32_159 = arith.constant 0 : i32
      %176 = tpu.memref_slice %arg3[%170, %c0_i32_159] : memref<16x128xf32, #tpu.memory_space<any>> -> memref<1x128xf32, #tpu.memory_space<any>>
      %c3_i32_160 = arith.constant 3 : i32
      %c0_i32_161 = arith.constant 0 : i32
      %177 = tpu.memref_slice %arg9[%c0_i32_156, %c3_i32_160, %c0_i32_161] : memref<2x8x128xf32, #tpu.memory_space<vmem>> -> memref<1x1x128xf32, #tpu.memory_space<vmem>>
      %178 = tpu.memref_squeeze %177 : memref<1x1x128xf32, #tpu.memory_space<vmem>> -> memref<1x128xf32, #tpu.memory_space<vmem>>
      %179 = tpu.memref_slice %arg10[%c0_i32_157, %c1_i32_158] : memref<2x2x!tpu.dma_semaphore, #tpu.memory_space<semaphore_mem>> -> memref<1x1x!tpu.dma_semaphore, #tpu.memory_space<semaphore_mem>>
      %180 = tpu.memref_squeeze %179 : memref<1x1x!tpu.dma_semaphore, #tpu.memory_space<semaphore_mem>> -> memref<!tpu.dma_semaphore, #tpu.memory_space<semaphore_mem>>
      tpu.enqueue_dma source(%176 : memref<1x128xf32, #tpu.memory_space<any>>) target(%178 : memref<1x128xf32, #tpu.memory_space<vmem>>) target_semaphore(%180 : memref<!tpu.dma_semaphore, #tpu.memory_space<semaphore_mem>>)
      %c4_i32_162 = arith.constant 4 : i32
      %c1_i32_163 = arith.constant 1 : i32
      %181 = arith.minsi %c4_i32_162, %c1_i32_163 : i32
      %c8_i32_164 = arith.constant 8 : i32
      %182 = arith.muli %181, %c8_i32_164 : i32
      %c4 = arith.constant 4 : index
      %183 = memref.load %arg1[%c4] : memref<8xi32, #tpu.memory_space<smem>>
      %184 = arith.addi %182, %183 : i32
      %c8_i32_165 = arith.constant 8 : i32
      %185 = arith.muli %181, %c8_i32_165 : i32
      %c4_166 = arith.constant 4 : index
      %186 = memref.load %arg2[%c4_166] : memref<8xi32, #tpu.memory_space<smem>>
      %187 = arith.addi %185, %186 : i32
      %c0_i32_167 = arith.constant 0 : i32
      %c0_i32_168 = arith.constant 0 : i32
      %c0_i32_169 = arith.constant 0 : i32
      %c0_i32_170 = arith.constant 0 : i32
      %188 = tpu.memref_slice %arg3[%184, %c0_i32_170] : memref<16x128xf32, #tpu.memory_space<any>> -> memref<1x128xf32, #tpu.memory_space<any>>
      %c4_i32_171 = arith.constant 4 : i32
      %c0_i32_172 = arith.constant 0 : i32
      %189 = tpu.memref_slice %arg8[%c0_i32_167, %c4_i32_171, %c0_i32_172] : memref<2x8x128xf32, #tpu.memory_space<vmem>> -> memref<1x1x128xf32, #tpu.memory_space<vmem>>
      %190 = tpu.memref_squeeze %189 : memref<1x1x128xf32, #tpu.memory_space<vmem>> -> memref<1x128xf32, #tpu.memory_space<vmem>>
      %191 = tpu.memref_slice %arg10[%c0_i32_168, %c0_i32_169] : memref<2x2x!tpu.dma_semaphore, #tpu.memory_space<semaphore_mem>> -> memref<1x1x!tpu.dma_semaphore, #tpu.memory_space<semaphore_mem>>
      %192 = tpu.memref_squeeze %191 : memref<1x1x!tpu.dma_semaphore, #tpu.memory_space<semaphore_mem>> -> memref<!tpu.dma_semaphore, #tpu.memory_space<semaphore_mem>>
      tpu.enqueue_dma source(%188 : memref<1x128xf32, #tpu.memory_space<any>>) target(%190 : memref<1x128xf32, #tpu.memory_space<vmem>>) target_semaphore(%192 : memref<!tpu.dma_semaphore, #tpu.memory_space<semaphore_mem>>)
      %c0_i32_173 = arith.constant 0 : i32
      %c0_i32_174 = arith.constant 0 : i32
      %c1_i32_175 = arith.constant 1 : i32
      %c0_i32_176 = arith.constant 0 : i32
      %193 = tpu.memref_slice %arg3[%187, %c0_i32_176] : memref<16x128xf32, #tpu.memory_space<any>> -> memref<1x128xf32, #tpu.memory_space<any>>
      %c4_i32_177 = arith.constant 4 : i32
      %c0_i32_178 = arith.constant 0 : i32
      %194 = tpu.memref_slice %arg9[%c0_i32_173, %c4_i32_177, %c0_i32_178] : memref<2x8x128xf32, #tpu.memory_space<vmem>> -> memref<1x1x128xf32, #tpu.memory_space<vmem>>
      %195 = tpu.memref_squeeze %194 : memref<1x1x128xf32, #tpu.memory_space<vmem>> -> memref<1x128xf32, #tpu.memory_space<vmem>>
      %196 = tpu.memref_slice %arg10[%c0_i32_174, %c1_i32_175] : memref<2x2x!tpu.dma_semaphore, #tpu.memory_space<semaphore_mem>> -> memref<1x1x!tpu.dma_semaphore, #tpu.memory_space<semaphore_mem>>
      %197 = tpu.memref_squeeze %196 : memref<1x1x!tpu.dma_semaphore, #tpu.memory_space<semaphore_mem>> -> memref<!tpu.dma_semaphore, #tpu.memory_space<semaphore_mem>>
      tpu.enqueue_dma source(%193 : memref<1x128xf32, #tpu.memory_space<any>>) target(%195 : memref<1x128xf32, #tpu.memory_space<vmem>>) target_semaphore(%197 : memref<!tpu.dma_semaphore, #tpu.memory_space<semaphore_mem>>)
      %c5_i32_179 = arith.constant 5 : i32
      %c1_i32_180 = arith.constant 1 : i32
      %198 = arith.minsi %c5_i32_179, %c1_i32_180 : i32
      %c8_i32_181 = arith.constant 8 : i32
      %199 = arith.muli %198, %c8_i32_181 : i32
      %c5 = arith.constant 5 : index
      %200 = memref.load %arg1[%c5] : memref<8xi32, #tpu.memory_space<smem>>
      %201 = arith.addi %199, %200 : i32
      %c8_i32_182 = arith.constant 8 : i32
      %202 = arith.muli %198, %c8_i32_182 : i32
      %c5_183 = arith.constant 5 : index
      %203 = memref.load %arg2[%c5_183] : memref<8xi32, #tpu.memory_space<smem>>
      %204 = arith.addi %202, %203 : i32
      %c0_i32_184 = arith.constant 0 : i32
      %c0_i32_185 = arith.constant 0 : i32
      %c0_i32_186 = arith.constant 0 : i32
      %c0_i32_187 = arith.constant 0 : i32
      %205 = tpu.memref_slice %arg3[%201, %c0_i32_187] : memref<16x128xf32, #tpu.memory_space<any>> -> memref<1x128xf32, #tpu.memory_space<any>>
      %c5_i32_188 = arith.constant 5 : i32
      %c0_i32_189 = arith.constant 0 : i32
      %206 = tpu.memref_slice %arg8[%c0_i32_184, %c5_i32_188, %c0_i32_189] : memref<2x8x128xf32, #tpu.memory_space<vmem>> -> memref<1x1x128xf32, #tpu.memory_space<vmem>>
      %207 = tpu.memref_squeeze %206 : memref<1x1x128xf32, #tpu.memory_space<vmem>> -> memref<1x128xf32, #tpu.memory_space<vmem>>
      %208 = tpu.memref_slice %arg10[%c0_i32_185, %c0_i32_186] : memref<2x2x!tpu.dma_semaphore, #tpu.memory_space<semaphore_mem>> -> memref<1x1x!tpu.dma_semaphore, #tpu.memory_space<semaphore_mem>>
      %209 = tpu.memref_squeeze %208 : memref<1x1x!tpu.dma_semaphore, #tpu.memory_space<semaphore_mem>> -> memref<!tpu.dma_semaphore, #tpu.memory_space<semaphore_mem>>
      tpu.enqueue_dma source(%205 : memref<1x128xf32, #tpu.memory_space<any>>) target(%207 : memref<1x128xf32, #tpu.memory_space<vmem>>) target_semaphore(%209 : memref<!tpu.dma_semaphore, #tpu.memory_space<semaphore_mem>>)
      %c0_i32_190 = arith.constant 0 : i32
      %c0_i32_191 = arith.constant 0 : i32
      %c1_i32_192 = arith.constant 1 : i32
      %c0_i32_193 = arith.constant 0 : i32
      %210 = tpu.memref_slice %arg3[%204, %c0_i32_193] : memref<16x128xf32, #tpu.memory_space<any>> -> memref<1x128xf32, #tpu.memory_space<any>>
      %c5_i32_194 = arith.constant 5 : i32
      %c0_i32_195 = arith.constant 0 : i32
      %211 = tpu.memref_slice %arg9[%c0_i32_190, %c5_i32_194, %c0_i32_195] : memref<2x8x128xf32, #tpu.memory_space<vmem>> -> memref<1x1x128xf32, #tpu.memory_space<vmem>>
      %212 = tpu.memref_squeeze %211 : memref<1x1x128xf32, #tpu.memory_space<vmem>> -> memref<1x128xf32, #tpu.memory_space<vmem>>
      %213 = tpu.memref_slice %arg10[%c0_i32_191, %c1_i32_192] : memref<2x2x!tpu.dma_semaphore, #tpu.memory_space<semaphore_mem>> -> memref<1x1x!tpu.dma_semaphore, #tpu.memory_space<semaphore_mem>>
      %214 = tpu.memref_squeeze %213 : memref<1x1x!tpu.dma_semaphore, #tpu.memory_space<semaphore_mem>> -> memref<!tpu.dma_semaphore, #tpu.memory_space<semaphore_mem>>
      tpu.enqueue_dma source(%210 : memref<1x128xf32, #tpu.memory_space<any>>) target(%212 : memref<1x128xf32, #tpu.memory_space<vmem>>) target_semaphore(%214 : memref<!tpu.dma_semaphore, #tpu.memory_space<semaphore_mem>>)
      %c6_i32_196 = arith.constant 6 : i32
      %c1_i32_197 = arith.constant 1 : i32
      %215 = arith.minsi %c6_i32_196, %c1_i32_197 : i32
      %c8_i32_198 = arith.constant 8 : i32
      %216 = arith.muli %215, %c8_i32_198 : i32
      %c6 = arith.constant 6 : index
      %217 = memref.load %arg1[%c6] : memref<8xi32, #tpu.memory_space<smem>>
      %218 = arith.addi %216, %217 : i32
      %c8_i32_199 = arith.constant 8 : i32
      %219 = arith.muli %215, %c8_i32_199 : i32
      %c6_200 = arith.constant 6 : index
      %220 = memref.load %arg2[%c6_200] : memref<8xi32, #tpu.memory_space<smem>>
      %221 = arith.addi %219, %220 : i32
      %c0_i32_201 = arith.constant 0 : i32
      %c0_i32_202 = arith.constant 0 : i32
      %c0_i32_203 = arith.constant 0 : i32
      %c0_i32_204 = arith.constant 0 : i32
      %222 = tpu.memref_slice %arg3[%218, %c0_i32_204] : memref<16x128xf32, #tpu.memory_space<any>> -> memref<1x128xf32, #tpu.memory_space<any>>
      %c6_i32_205 = arith.constant 6 : i32
      %c0_i32_206 = arith.constant 0 : i32
      %223 = tpu.memref_slice %arg8[%c0_i32_201, %c6_i32_205, %c0_i32_206] : memref<2x8x128xf32, #tpu.memory_space<vmem>> -> memref<1x1x128xf32, #tpu.memory_space<vmem>>
      %224 = tpu.memref_squeeze %223 : memref<1x1x128xf32, #tpu.memory_space<vmem>> -> memref<1x128xf32, #tpu.memory_space<vmem>>
      %225 = tpu.memref_slice %arg10[%c0_i32_202, %c0_i32_203] : memref<2x2x!tpu.dma_semaphore, #tpu.memory_space<semaphore_mem>> -> memref<1x1x!tpu.dma_semaphore, #tpu.memory_space<semaphore_mem>>
      %226 = tpu.memref_squeeze %225 : memref<1x1x!tpu.dma_semaphore, #tpu.memory_space<semaphore_mem>> -> memref<!tpu.dma_semaphore, #tpu.memory_space<semaphore_mem>>
      tpu.enqueue_dma source(%222 : memref<1x128xf32, #tpu.memory_space<any>>) target(%224 : memref<1x128xf32, #tpu.memory_space<vmem>>) target_semaphore(%226 : memref<!tpu.dma_semaphore, #tpu.memory_space<semaphore_mem>>)
      %c0_i32_207 = arith.constant 0 : i32
      %c0_i32_208 = arith.constant 0 : i32
      %c1_i32_209 = arith.constant 1 : i32
      %c0_i32_210 = arith.constant 0 : i32
      %227 = tpu.memref_slice %arg3[%221, %c0_i32_210] : memref<16x128xf32, #tpu.memory_space<any>> -> memref<1x128xf32, #tpu.memory_space<any>>
      %c6_i32_211 = arith.constant 6 : i32
      %c0_i32_212 = arith.constant 0 : i32
      %228 = tpu.memref_slice %arg9[%c0_i32_207, %c6_i32_211, %c0_i32_212] : memref<2x8x128xf32, #tpu.memory_space<vmem>> -> memref<1x1x128xf32, #tpu.memory_space<vmem>>
      %229 = tpu.memref_squeeze %228 : memref<1x1x128xf32, #tpu.memory_space<vmem>> -> memref<1x128xf32, #tpu.memory_space<vmem>>
      %230 = tpu.memref_slice %arg10[%c0_i32_208, %c1_i32_209] : memref<2x2x!tpu.dma_semaphore, #tpu.memory_space<semaphore_mem>> -> memref<1x1x!tpu.dma_semaphore, #tpu.memory_space<semaphore_mem>>
      %231 = tpu.memref_squeeze %230 : memref<1x1x!tpu.dma_semaphore, #tpu.memory_space<semaphore_mem>> -> memref<!tpu.dma_semaphore, #tpu.memory_space<semaphore_mem>>
      tpu.enqueue_dma source(%227 : memref<1x128xf32, #tpu.memory_space<any>>) target(%229 : memref<1x128xf32, #tpu.memory_space<vmem>>) target_semaphore(%231 : memref<!tpu.dma_semaphore, #tpu.memory_space<semaphore_mem>>)
      %c7_i32_213 = arith.constant 7 : i32
      %c1_i32_214 = arith.constant 1 : i32
      %232 = arith.minsi %c7_i32_213, %c1_i32_214 : i32
      %c8_i32_215 = arith.constant 8 : i32
      %233 = arith.muli %232, %c8_i32_215 : i32
      %c7 = arith.constant 7 : index
      %234 = memref.load %arg1[%c7] : memref<8xi32, #tpu.memory_space<smem>>
      %235 = arith.addi %233, %234 : i32
      %c8_i32_216 = arith.constant 8 : i32
      %236 = arith.muli %232, %c8_i32_216 : i32
      %c7_217 = arith.constant 7 : index
      %237 = memref.load %arg2[%c7_217] : memref<8xi32, #tpu.memory_space<smem>>
      %238 = arith.addi %236, %237 : i32
      %c0_i32_218 = arith.constant 0 : i32
      %c0_i32_219 = arith.constant 0 : i32
      %c0_i32_220 = arith.constant 0 : i32
      %c0_i32_221 = arith.constant 0 : i32
      %239 = tpu.memref_slice %arg3[%235, %c0_i32_221] : memref<16x128xf32, #tpu.memory_space<any>> -> memref<1x128xf32, #tpu.memory_space<any>>
      %c7_i32_222 = arith.constant 7 : i32
      %c0_i32_223 = arith.constant 0 : i32
      %240 = tpu.memref_slice %arg8[%c0_i32_218, %c7_i32_222, %c0_i32_223] : memref<2x8x128xf32, #tpu.memory_space<vmem>> -> memref<1x1x128xf32, #tpu.memory_space<vmem>>
      %241 = tpu.memref_squeeze %240 : memref<1x1x128xf32, #tpu.memory_space<vmem>> -> memref<1x128xf32, #tpu.memory_space<vmem>>
      %242 = tpu.memref_slice %arg10[%c0_i32_219, %c0_i32_220] : memref<2x2x!tpu.dma_semaphore, #tpu.memory_space<semaphore_mem>> -> memref<1x1x!tpu.dma_semaphore, #tpu.memory_space<semaphore_mem>>
      %243 = tpu.memref_squeeze %242 : memref<1x1x!tpu.dma_semaphore, #tpu.memory_space<semaphore_mem>> -> memref<!tpu.dma_semaphore, #tpu.memory_space<semaphore_mem>>
      tpu.enqueue_dma source(%239 : memref<1x128xf32, #tpu.memory_space<any>>) target(%241 : memref<1x128xf32, #tpu.memory_space<vmem>>) target_semaphore(%243 : memref<!tpu.dma_semaphore, #tpu.memory_space<semaphore_mem>>)
      %c0_i32_224 = arith.constant 0 : i32
      %c0_i32_225 = arith.constant 0 : i32
      %c1_i32_226 = arith.constant 1 : i32
      %c0_i32_227 = arith.constant 0 : i32
      %244 = tpu.memref_slice %arg3[%238, %c0_i32_227] : memref<16x128xf32, #tpu.memory_space<any>> -> memref<1x128xf32, #tpu.memory_space<any>>
      %c7_i32_228 = arith.constant 7 : i32
      %c0_i32_229 = arith.constant 0 : i32
      %245 = tpu.memref_slice %arg9[%c0_i32_224, %c7_i32_228, %c0_i32_229] : memref<2x8x128xf32, #tpu.memory_space<vmem>> -> memref<1x1x128xf32, #tpu.memory_space<vmem>>
      %246 = tpu.memref_squeeze %245 : memref<1x1x128xf32, #tpu.memory_space<vmem>> -> memref<1x128xf32, #tpu.memory_space<vmem>>
      %247 = tpu.memref_slice %arg10[%c0_i32_225, %c1_i32_226] : memref<2x2x!tpu.dma_semaphore, #tpu.memory_space<semaphore_mem>> -> memref<1x1x!tpu.dma_semaphore, #tpu.memory_space<semaphore_mem>>
      %248 = tpu.memref_squeeze %247 : memref<1x1x!tpu.dma_semaphore, #tpu.memory_space<semaphore_mem>> -> memref<!tpu.dma_semaphore, #tpu.memory_space<semaphore_mem>>
      tpu.enqueue_dma source(%244 : memref<1x128xf32, #tpu.memory_space<any>>) target(%246 : memref<1x128xf32, #tpu.memory_space<vmem>>) target_semaphore(%248 : memref<!tpu.dma_semaphore, #tpu.memory_space<semaphore_mem>>)
    } else {
    }
    %c1_i32_5 = arith.constant 1 : i32
    %13 = arith.addi %arg0, %c1_i32_5 : i32
    %c1_i32_6 = arith.constant 1 : i32
    %14 = arith.cmpi slt, %13, %c1_i32_6 : i32
    %15 = arith.extui %14 : i1 to i32
    %c0_i32_7 = arith.constant 0 : i32
    %16 = arith.cmpi ne, %15, %c0_i32_7 : i32
    scf.if %16 {
      %c1_i32_94 = arith.constant 1 : i32
      %113 = arith.addi %arg0, %c1_i32_94 : i32
      %c1_i32_95 = arith.constant 1 : i32
      %114 = arith.addi %arg0, %c1_i32_95 : i32
      %c2_i32_96 = arith.constant 2 : i32
      %c0_i32_97 = arith.constant 0 : i32
      %115 = arith.cmpi eq, %c2_i32_96, %c0_i32_97 : i32
      %c1_i32_98 = arith.constant 1 : i32
      %116 = arith.select %115, %c1_i32_98, %c2_i32_96 : i32
      %117 = arith.remsi %114, %116 : i32
      %c0_i32_99 = arith.constant 0 : i32
      %118 = arith.cmpi ne, %117, %c0_i32_99 : i32
      %c0_i32_100 = arith.constant 0 : i32
      %119 = arith.cmpi slt, %117, %c0_i32_100 : i32
      %c0_i32_101 = arith.constant 0 : i32
      %120 = arith.cmpi slt, %116, %c0_i32_101 : i32
      %121 = arith.xori %119, %120 : i1
      %122 = arith.andi %121, %118 : i1
      %123 = arith.addi %117, %116 : i32
      %124 = arith.select %122, %123, %117 : i32
      %c8_i32 = arith.constant 8 : i32
      %125 = arith.muli %113, %c8_i32 : i32
      %c0_i32_102 = arith.constant 0 : i32
      %126 = arith.addi %125, %c0_i32_102 : i32
      %c1_i32_103 = arith.constant 1 : i32
      %127 = arith.minsi %126, %c1_i32_103 : i32
      %c8_i32_104 = arith.constant 8 : i32
      %128 = arith.muli %127, %c8_i32_104 : i32
      %129 = arith.index_cast %126 : i32 to index
      %130 = memref.load %arg1[%129] : memref<8xi32, #tpu.memory_space<smem>>
      %131 = arith.addi %128, %130 : i32
      %c8_i32_105 = arith.constant 8 : i32
      %132 = arith.muli %127, %c8_i32_105 : i32
      %133 = arith.index_cast %126 : i32 to index
      %134 = memref.load %arg2[%133] : memref<8xi32, #tpu.memory_space<smem>>
      %135 = arith.addi %132, %134 : i32
      %c0_i32_106 = arith.constant 0 : i32
      %c0_i32_107 = arith.constant 0 : i32
      %136 = tpu.memref_slice %arg3[%131, %c0_i32_107] : memref<16x128xf32, #tpu.memory_space<any>> -> memref<1x128xf32, #tpu.memory_space<any>>
      %c0_i32_108 = arith.constant 0 : i32
      %c0_i32_109 = arith.constant 0 : i32
      %137 = tpu.memref_slice %arg8[%124, %c0_i32_108, %c0_i32_109] : memref<2x8x128xf32, #tpu.memory_space<vmem>> -> memref<1x1x128xf32, #tpu.memory_space<vmem>>
      %138 = tpu.memref_squeeze %137 : memref<1x1x128xf32, #tpu.memory_space<vmem>> -> memref<1x128xf32, #tpu.memory_space<vmem>>
      %139 = tpu.memref_slice %arg10[%124, %c0_i32_106] : memref<2x2x!tpu.dma_semaphore, #tpu.memory_space<semaphore_mem>> -> memref<1x1x!tpu.dma_semaphore, #tpu.memory_space<semaphore_mem>>
      %140 = tpu.memref_squeeze %139 : memref<1x1x!tpu.dma_semaphore, #tpu.memory_space<semaphore_mem>> -> memref<!tpu.dma_semaphore, #tpu.memory_space<semaphore_mem>>
      tpu.enqueue_dma source(%136 : memref<1x128xf32, #tpu.memory_space<any>>) target(%138 : memref<1x128xf32, #tpu.memory_space<vmem>>) target_semaphore(%140 : memref<!tpu.dma_semaphore, #tpu.memory_space<semaphore_mem>>)
      %c1_i32_110 = arith.constant 1 : i32
      %c0_i32_111 = arith.constant 0 : i32
      %141 = tpu.memref_slice %arg3[%135, %c0_i32_111] : memref<16x128xf32, #tpu.memory_space<any>> -> memref<1x128xf32, #tpu.memory_space<any>>
      %c0_i32_112 = arith.constant 0 : i32
      %c0_i32_113 = arith.constant 0 : i32
      %142 = tpu.memref_slice %arg9[%124, %c0_i32_112, %c0_i32_113] : memref<2x8x128xf32, #tpu.memory_space<vmem>> -> memref<1x1x128xf32, #tpu.memory_space<vmem>>
      %143 = tpu.memref_squeeze %142 : memref<1x1x128xf32, #tpu.memory_space<vmem>> -> memref<1x128xf32, #tpu.memory_space<vmem>>
      %144 = tpu.memref_slice %arg10[%124, %c1_i32_110] : memref<2x2x!tpu.dma_semaphore, #tpu.memory_space<semaphore_mem>> -> memref<1x1x!tpu.dma_semaphore, #tpu.memory_space<semaphore_mem>>
      %145 = tpu.memref_squeeze %144 : memref<1x1x!tpu.dma_semaphore, #tpu.memory_space<semaphore_mem>> -> memref<!tpu.dma_semaphore, #tpu.memory_space<semaphore_mem>>
      tpu.enqueue_dma source(%141 : memref<1x128xf32, #tpu.memory_space<any>>) target(%143 : memref<1x128xf32, #tpu.memory_space<vmem>>) target_semaphore(%145 : memref<!tpu.dma_semaphore, #tpu.memory_space<semaphore_mem>>)
      %c1_i32_114 = arith.constant 1 : i32
      %146 = arith.addi %125, %c1_i32_114 : i32
      %c1_i32_115 = arith.constant 1 : i32
      %147 = arith.minsi %146, %c1_i32_115 : i32
      %c8_i32_116 = arith.constant 8 : i32
      %148 = arith.muli %147, %c8_i32_116 : i32
      %149 = arith.index_cast %146 : i32 to index
      %150 = memref.load %arg1[%149] : memref<8xi32, #tpu.memory_space<smem>>
      %151 = arith.addi %148, %150 : i32
      %c8_i32_117 = arith.constant 8 : i32
      %152 = arith.muli %147, %c8_i32_117 : i32
      %153 = arith.index_cast %146 : i32 to index
      %154 = memref.load %arg2[%153] : memref<8xi32, #tpu.memory_space<smem>>
      %155 = arith.addi %152, %154 : i32
      %c0_i32_118 = arith.constant 0 : i32
      %c0_i32_119 = arith.constant 0 : i32
      %156 = tpu.memref_slice %arg3[%151, %c0_i32_119] : memref<16x128xf32, #tpu.memory_space<any>> -> memref<1x128xf32, #tpu.memory_space<any>>
      %c1_i32_120 = arith.constant 1 : i32
      %c0_i32_121 = arith.constant 0 : i32
      %157 = tpu.memref_slice %arg8[%124, %c1_i32_120, %c0_i32_121] : memref<2x8x128xf32, #tpu.memory_space<vmem>> -> memref<1x1x128xf32, #tpu.memory_space<vmem>>
      %158 = tpu.memref_squeeze %157 : memref<1x1x128xf32, #tpu.memory_space<vmem>> -> memref<1x128xf32, #tpu.memory_space<vmem>>
      %159 = tpu.memref_slice %arg10[%124, %c0_i32_118] : memref<2x2x!tpu.dma_semaphore, #tpu.memory_space<semaphore_mem>> -> memref<1x1x!tpu.dma_semaphore, #tpu.memory_space<semaphore_mem>>
      %160 = tpu.memref_squeeze %159 : memref<1x1x!tpu.dma_semaphore, #tpu.memory_space<semaphore_mem>> -> memref<!tpu.dma_semaphore, #tpu.memory_space<semaphore_mem>>
      tpu.enqueue_dma source(%156 : memref<1x128xf32, #tpu.memory_space<any>>) target(%158 : memref<1x128xf32, #tpu.memory_space<vmem>>) target_semaphore(%160 : memref<!tpu.dma_semaphore, #tpu.memory_space<semaphore_mem>>)
      %c1_i32_122 = arith.constant 1 : i32
      %c0_i32_123 = arith.constant 0 : i32
      %161 = tpu.memref_slice %arg3[%155, %c0_i32_123] : memref<16x128xf32, #tpu.memory_space<any>> -> memref<1x128xf32, #tpu.memory_space<any>>
      %c1_i32_124 = arith.constant 1 : i32
      %c0_i32_125 = arith.constant 0 : i32
      %162 = tpu.memref_slice %arg9[%124, %c1_i32_124, %c0_i32_125] : memref<2x8x128xf32, #tpu.memory_space<vmem>> -> memref<1x1x128xf32, #tpu.memory_space<vmem>>
      %163 = tpu.memref_squeeze %162 : memref<1x1x128xf32, #tpu.memory_space<vmem>> -> memref<1x128xf32, #tpu.memory_space<vmem>>
      %164 = tpu.memref_slice %arg10[%124, %c1_i32_122] : memref<2x2x!tpu.dma_semaphore, #tpu.memory_space<semaphore_mem>> -> memref<1x1x!tpu.dma_semaphore, #tpu.memory_space<semaphore_mem>>
      %165 = tpu.memref_squeeze %164 : memref<1x1x!tpu.dma_semaphore, #tpu.memory_space<semaphore_mem>> -> memref<!tpu.dma_semaphore, #tpu.memory_space<semaphore_mem>>
      tpu.enqueue_dma source(%161 : memref<1x128xf32, #tpu.memory_space<any>>) target(%163 : memref<1x128xf32, #tpu.memory_space<vmem>>) target_semaphore(%165 : memref<!tpu.dma_semaphore, #tpu.memory_space<semaphore_mem>>)
      %c2_i32_126 = arith.constant 2 : i32
      %166 = arith.addi %125, %c2_i32_126 : i32
      %c1_i32_127 = arith.constant 1 : i32
      %167 = arith.minsi %166, %c1_i32_127 : i32
      %c8_i32_128 = arith.constant 8 : i32
      %168 = arith.muli %167, %c8_i32_128 : i32
      %169 = arith.index_cast %166 : i32 to index
      %170 = memref.load %arg1[%169] : memref<8xi32, #tpu.memory_space<smem>>
      %171 = arith.addi %168, %170 : i32
      %c8_i32_129 = arith.constant 8 : i32
      %172 = arith.muli %167, %c8_i32_129 : i32
      %173 = arith.index_cast %166 : i32 to index
      %174 = memref.load %arg2[%173] : memref<8xi32, #tpu.memory_space<smem>>
      %175 = arith.addi %172, %174 : i32
      %c0_i32_130 = arith.constant 0 : i32
      %c0_i32_131 = arith.constant 0 : i32
      %176 = tpu.memref_slice %arg3[%171, %c0_i32_131] : memref<16x128xf32, #tpu.memory_space<any>> -> memref<1x128xf32, #tpu.memory_space<any>>
      %c2_i32_132 = arith.constant 2 : i32
      %c0_i32_133 = arith.constant 0 : i32
      %177 = tpu.memref_slice %arg8[%124, %c2_i32_132, %c0_i32_133] : memref<2x8x128xf32, #tpu.memory_space<vmem>> -> memref<1x1x128xf32, #tpu.memory_space<vmem>>
      %178 = tpu.memref_squeeze %177 : memref<1x1x128xf32, #tpu.memory_space<vmem>> -> memref<1x128xf32, #tpu.memory_space<vmem>>
      %179 = tpu.memref_slice %arg10[%124, %c0_i32_130] : memref<2x2x!tpu.dma_semaphore, #tpu.memory_space<semaphore_mem>> -> memref<1x1x!tpu.dma_semaphore, #tpu.memory_space<semaphore_mem>>
      %180 = tpu.memref_squeeze %179 : memref<1x1x!tpu.dma_semaphore, #tpu.memory_space<semaphore_mem>> -> memref<!tpu.dma_semaphore, #tpu.memory_space<semaphore_mem>>
      tpu.enqueue_dma source(%176 : memref<1x128xf32, #tpu.memory_space<any>>) target(%178 : memref<1x128xf32, #tpu.memory_space<vmem>>) target_semaphore(%180 : memref<!tpu.dma_semaphore, #tpu.memory_space<semaphore_mem>>)
      %c1_i32_134 = arith.constant 1 : i32
      %c0_i32_135 = arith.constant 0 : i32
      %181 = tpu.memref_slice %arg3[%175, %c0_i32_135] : memref<16x128xf32, #tpu.memory_space<any>> -> memref<1x128xf32, #tpu.memory_space<any>>
      %c2_i32_136 = arith.constant 2 : i32
      %c0_i32_137 = arith.constant 0 : i32
      %182 = tpu.memref_slice %arg9[%124, %c2_i32_136, %c0_i32_137] : memref<2x8x128xf32, #tpu.memory_space<vmem>> -> memref<1x1x128xf32, #tpu.memory_space<vmem>>
      %183 = tpu.memref_squeeze %182 : memref<1x1x128xf32, #tpu.memory_space<vmem>> -> memref<1x128xf32, #tpu.memory_space<vmem>>
      %184 = tpu.memref_slice %arg10[%124, %c1_i32_134] : memref<2x2x!tpu.dma_semaphore, #tpu.memory_space<semaphore_mem>> -> memref<1x1x!tpu.dma_semaphore, #tpu.memory_space<semaphore_mem>>
      %185 = tpu.memref_squeeze %184 : memref<1x1x!tpu.dma_semaphore, #tpu.memory_space<semaphore_mem>> -> memref<!tpu.dma_semaphore, #tpu.memory_space<semaphore_mem>>
      tpu.enqueue_dma source(%181 : memref<1x128xf32, #tpu.memory_space<any>>) target(%183 : memref<1x128xf32, #tpu.memory_space<vmem>>) target_semaphore(%185 : memref<!tpu.dma_semaphore, #tpu.memory_space<semaphore_mem>>)
      %c3_i32_138 = arith.constant 3 : i32
      %186 = arith.addi %125, %c3_i32_138 : i32
      %c1_i32_139 = arith.constant 1 : i32
      %187 = arith.minsi %186, %c1_i32_139 : i32
      %c8_i32_140 = arith.constant 8 : i32
      %188 = arith.muli %187, %c8_i32_140 : i32
      %189 = arith.index_cast %186 : i32 to index
      %190 = memref.load %arg1[%189] : memref<8xi32, #tpu.memory_space<smem>>
      %191 = arith.addi %188, %190 : i32
      %c8_i32_141 = arith.constant 8 : i32
      %192 = arith.muli %187, %c8_i32_141 : i32
      %193 = arith.index_cast %186 : i32 to index
      %194 = memref.load %arg2[%193] : memref<8xi32, #tpu.memory_space<smem>>
      %195 = arith.addi %192, %194 : i32
      %c0_i32_142 = arith.constant 0 : i32
      %c0_i32_143 = arith.constant 0 : i32
      %196 = tpu.memref_slice %arg3[%191, %c0_i32_143] : memref<16x128xf32, #tpu.memory_space<any>> -> memref<1x128xf32, #tpu.memory_space<any>>
      %c3_i32_144 = arith.constant 3 : i32
      %c0_i32_145 = arith.constant 0 : i32
      %197 = tpu.memref_slice %arg8[%124, %c3_i32_144, %c0_i32_145] : memref<2x8x128xf32, #tpu.memory_space<vmem>> -> memref<1x1x128xf32, #tpu.memory_space<vmem>>
      %198 = tpu.memref_squeeze %197 : memref<1x1x128xf32, #tpu.memory_space<vmem>> -> memref<1x128xf32, #tpu.memory_space<vmem>>
      %199 = tpu.memref_slice %arg10[%124, %c0_i32_142] : memref<2x2x!tpu.dma_semaphore, #tpu.memory_space<semaphore_mem>> -> memref<1x1x!tpu.dma_semaphore, #tpu.memory_space<semaphore_mem>>
      %200 = tpu.memref_squeeze %199 : memref<1x1x!tpu.dma_semaphore, #tpu.memory_space<semaphore_mem>> -> memref<!tpu.dma_semaphore, #tpu.memory_space<semaphore_mem>>
      tpu.enqueue_dma source(%196 : memref<1x128xf32, #tpu.memory_space<any>>) target(%198 : memref<1x128xf32, #tpu.memory_space<vmem>>) target_semaphore(%200 : memref<!tpu.dma_semaphore, #tpu.memory_space<semaphore_mem>>)
      %c1_i32_146 = arith.constant 1 : i32
      %c0_i32_147 = arith.constant 0 : i32
      %201 = tpu.memref_slice %arg3[%195, %c0_i32_147] : memref<16x128xf32, #tpu.memory_space<any>> -> memref<1x128xf32, #tpu.memory_space<any>>
      %c3_i32_148 = arith.constant 3 : i32
      %c0_i32_149 = arith.constant 0 : i32
      %202 = tpu.memref_slice %arg9[%124, %c3_i32_148, %c0_i32_149] : memref<2x8x128xf32, #tpu.memory_space<vmem>> -> memref<1x1x128xf32, #tpu.memory_space<vmem>>
      %203 = tpu.memref_squeeze %202 : memref<1x1x128xf32, #tpu.memory_space<vmem>> -> memref<1x128xf32, #tpu.memory_space<vmem>>
      %204 = tpu.memref_slice %arg10[%124, %c1_i32_146] : memref<2x2x!tpu.dma_semaphore, #tpu.memory_space<semaphore_mem>> -> memref<1x1x!tpu.dma_semaphore, #tpu.memory_space<semaphore_mem>>
      %205 = tpu.memref_squeeze %204 : memref<1x1x!tpu.dma_semaphore, #tpu.memory_space<semaphore_mem>> -> memref<!tpu.dma_semaphore, #tpu.memory_space<semaphore_mem>>
      tpu.enqueue_dma source(%201 : memref<1x128xf32, #tpu.memory_space<any>>) target(%203 : memref<1x128xf32, #tpu.memory_space<vmem>>) target_semaphore(%205 : memref<!tpu.dma_semaphore, #tpu.memory_space<semaphore_mem>>)
      %c4_i32_150 = arith.constant 4 : i32
      %206 = arith.addi %125, %c4_i32_150 : i32
      %c1_i32_151 = arith.constant 1 : i32
      %207 = arith.minsi %206, %c1_i32_151 : i32
      %c8_i32_152 = arith.constant 8 : i32
      %208 = arith.muli %207, %c8_i32_152 : i32
      %209 = arith.index_cast %206 : i32 to index
      %210 = memref.load %arg1[%209] : memref<8xi32, #tpu.memory_space<smem>>
      %211 = arith.addi %208, %210 : i32
      %c8_i32_153 = arith.constant 8 : i32
      %212 = arith.muli %207, %c8_i32_153 : i32
      %213 = arith.index_cast %206 : i32 to index
      %214 = memref.load %arg2[%213] : memref<8xi32, #tpu.memory_space<smem>>
      %215 = arith.addi %212, %214 : i32
      %c0_i32_154 = arith.constant 0 : i32
      %c0_i32_155 = arith.constant 0 : i32
      %216 = tpu.memref_slice %arg3[%211, %c0_i32_155] : memref<16x128xf32, #tpu.memory_space<any>> -> memref<1x128xf32, #tpu.memory_space<any>>
      %c4_i32_156 = arith.constant 4 : i32
      %c0_i32_157 = arith.constant 0 : i32
      %217 = tpu.memref_slice %arg8[%124, %c4_i32_156, %c0_i32_157] : memref<2x8x128xf32, #tpu.memory_space<vmem>> -> memref<1x1x128xf32, #tpu.memory_space<vmem>>
      %218 = tpu.memref_squeeze %217 : memref<1x1x128xf32, #tpu.memory_space<vmem>> -> memref<1x128xf32, #tpu.memory_space<vmem>>
      %219 = tpu.memref_slice %arg10[%124, %c0_i32_154] : memref<2x2x!tpu.dma_semaphore, #tpu.memory_space<semaphore_mem>> -> memref<1x1x!tpu.dma_semaphore, #tpu.memory_space<semaphore_mem>>
      %220 = tpu.memref_squeeze %219 : memref<1x1x!tpu.dma_semaphore, #tpu.memory_space<semaphore_mem>> -> memref<!tpu.dma_semaphore, #tpu.memory_space<semaphore_mem>>
      tpu.enqueue_dma source(%216 : memref<1x128xf32, #tpu.memory_space<any>>) target(%218 : memref<1x128xf32, #tpu.memory_space<vmem>>) target_semaphore(%220 : memref<!tpu.dma_semaphore, #tpu.memory_space<semaphore_mem>>)
      %c1_i32_158 = arith.constant 1 : i32
      %c0_i32_159 = arith.constant 0 : i32
      %221 = tpu.memref_slice %arg3[%215, %c0_i32_159] : memref<16x128xf32, #tpu.memory_space<any>> -> memref<1x128xf32, #tpu.memory_space<any>>
      %c4_i32_160 = arith.constant 4 : i32
      %c0_i32_161 = arith.constant 0 : i32
      %222 = tpu.memref_slice %arg9[%124, %c4_i32_160, %c0_i32_161] : memref<2x8x128xf32, #tpu.memory_space<vmem>> -> memref<1x1x128xf32, #tpu.memory_space<vmem>>
      %223 = tpu.memref_squeeze %222 : memref<1x1x128xf32, #tpu.memory_space<vmem>> -> memref<1x128xf32, #tpu.memory_space<vmem>>
      %224 = tpu.memref_slice %arg10[%124, %c1_i32_158] : memref<2x2x!tpu.dma_semaphore, #tpu.memory_space<semaphore_mem>> -> memref<1x1x!tpu.dma_semaphore, #tpu.memory_space<semaphore_mem>>
      %225 = tpu.memref_squeeze %224 : memref<1x1x!tpu.dma_semaphore, #tpu.memory_space<semaphore_mem>> -> memref<!tpu.dma_semaphore, #tpu.memory_space<semaphore_mem>>
      tpu.enqueue_dma source(%221 : memref<1x128xf32, #tpu.memory_space<any>>) target(%223 : memref<1x128xf32, #tpu.memory_space<vmem>>) target_semaphore(%225 : memref<!tpu.dma_semaphore, #tpu.memory_space<semaphore_mem>>)
      %c5_i32_162 = arith.constant 5 : i32
      %226 = arith.addi %125, %c5_i32_162 : i32
      %c1_i32_163 = arith.constant 1 : i32
      %227 = arith.minsi %226, %c1_i32_163 : i32
      %c8_i32_164 = arith.constant 8 : i32
      %228 = arith.muli %227, %c8_i32_164 : i32
      %229 = arith.index_cast %226 : i32 to index
      %230 = memref.load %arg1[%229] : memref<8xi32, #tpu.memory_space<smem>>
      %231 = arith.addi %228, %230 : i32
      %c8_i32_165 = arith.constant 8 : i32
      %232 = arith.muli %227, %c8_i32_165 : i32
      %233 = arith.index_cast %226 : i32 to index
      %234 = memref.load %arg2[%233] : memref<8xi32, #tpu.memory_space<smem>>
      %235 = arith.addi %232, %234 : i32
      %c0_i32_166 = arith.constant 0 : i32
      %c0_i32_167 = arith.constant 0 : i32
      %236 = tpu.memref_slice %arg3[%231, %c0_i32_167] : memref<16x128xf32, #tpu.memory_space<any>> -> memref<1x128xf32, #tpu.memory_space<any>>
      %c5_i32_168 = arith.constant 5 : i32
      %c0_i32_169 = arith.constant 0 : i32
      %237 = tpu.memref_slice %arg8[%124, %c5_i32_168, %c0_i32_169] : memref<2x8x128xf32, #tpu.memory_space<vmem>> -> memref<1x1x128xf32, #tpu.memory_space<vmem>>
      %238 = tpu.memref_squeeze %237 : memref<1x1x128xf32, #tpu.memory_space<vmem>> -> memref<1x128xf32, #tpu.memory_space<vmem>>
      %239 = tpu.memref_slice %arg10[%124, %c0_i32_166] : memref<2x2x!tpu.dma_semaphore, #tpu.memory_space<semaphore_mem>> -> memref<1x1x!tpu.dma_semaphore, #tpu.memory_space<semaphore_mem>>
      %240 = tpu.memref_squeeze %239 : memref<1x1x!tpu.dma_semaphore, #tpu.memory_space<semaphore_mem>> -> memref<!tpu.dma_semaphore, #tpu.memory_space<semaphore_mem>>
      tpu.enqueue_dma source(%236 : memref<1x128xf32, #tpu.memory_space<any>>) target(%238 : memref<1x128xf32, #tpu.memory_space<vmem>>) target_semaphore(%240 : memref<!tpu.dma_semaphore, #tpu.memory_space<semaphore_mem>>)
      %c1_i32_170 = arith.constant 1 : i32
      %c0_i32_171 = arith.constant 0 : i32
      %241 = tpu.memref_slice %arg3[%235, %c0_i32_171] : memref<16x128xf32, #tpu.memory_space<any>> -> memref<1x128xf32, #tpu.memory_space<any>>
      %c5_i32_172 = arith.constant 5 : i32
      %c0_i32_173 = arith.constant 0 : i32
      %242 = tpu.memref_slice %arg9[%124, %c5_i32_172, %c0_i32_173] : memref<2x8x128xf32, #tpu.memory_space<vmem>> -> memref<1x1x128xf32, #tpu.memory_space<vmem>>
      %243 = tpu.memref_squeeze %242 : memref<1x1x128xf32, #tpu.memory_space<vmem>> -> memref<1x128xf32, #tpu.memory_space<vmem>>
      %244 = tpu.memref_slice %arg10[%124, %c1_i32_170] : memref<2x2x!tpu.dma_semaphore, #tpu.memory_space<semaphore_mem>> -> memref<1x1x!tpu.dma_semaphore, #tpu.memory_space<semaphore_mem>>
      %245 = tpu.memref_squeeze %244 : memref<1x1x!tpu.dma_semaphore, #tpu.memory_space<semaphore_mem>> -> memref<!tpu.dma_semaphore, #tpu.memory_space<semaphore_mem>>
      tpu.enqueue_dma source(%241 : memref<1x128xf32, #tpu.memory_space<any>>) target(%243 : memref<1x128xf32, #tpu.memory_space<vmem>>) target_semaphore(%245 : memref<!tpu.dma_semaphore, #tpu.memory_space<semaphore_mem>>)
      %c6_i32_174 = arith.constant 6 : i32
      %246 = arith.addi %125, %c6_i32_174 : i32
      %c1_i32_175 = arith.constant 1 : i32
      %247 = arith.minsi %246, %c1_i32_175 : i32
      %c8_i32_176 = arith.constant 8 : i32
      %248 = arith.muli %247, %c8_i32_176 : i32
      %249 = arith.index_cast %246 : i32 to index
      %250 = memref.load %arg1[%249] : memref<8xi32, #tpu.memory_space<smem>>
      %251 = arith.addi %248, %250 : i32
      %c8_i32_177 = arith.constant 8 : i32
      %252 = arith.muli %247, %c8_i32_177 : i32
      %253 = arith.index_cast %246 : i32 to index
      %254 = memref.load %arg2[%253] : memref<8xi32, #tpu.memory_space<smem>>
      %255 = arith.addi %252, %254 : i32
      %c0_i32_178 = arith.constant 0 : i32
      %c0_i32_179 = arith.constant 0 : i32
      %256 = tpu.memref_slice %arg3[%251, %c0_i32_179] : memref<16x128xf32, #tpu.memory_space<any>> -> memref<1x128xf32, #tpu.memory_space<any>>
      %c6_i32_180 = arith.constant 6 : i32
      %c0_i32_181 = arith.constant 0 : i32
      %257 = tpu.memref_slice %arg8[%124, %c6_i32_180, %c0_i32_181] : memref<2x8x128xf32, #tpu.memory_space<vmem>> -> memref<1x1x128xf32, #tpu.memory_space<vmem>>
      %258 = tpu.memref_squeeze %257 : memref<1x1x128xf32, #tpu.memory_space<vmem>> -> memref<1x128xf32, #tpu.memory_space<vmem>>
      %259 = tpu.memref_slice %arg10[%124, %c0_i32_178] : memref<2x2x!tpu.dma_semaphore, #tpu.memory_space<semaphore_mem>> -> memref<1x1x!tpu.dma_semaphore, #tpu.memory_space<semaphore_mem>>
      %260 = tpu.memref_squeeze %259 : memref<1x1x!tpu.dma_semaphore, #tpu.memory_space<semaphore_mem>> -> memref<!tpu.dma_semaphore, #tpu.memory_space<semaphore_mem>>
      tpu.enqueue_dma source(%256 : memref<1x128xf32, #tpu.memory_space<any>>) target(%258 : memref<1x128xf32, #tpu.memory_space<vmem>>) target_semaphore(%260 : memref<!tpu.dma_semaphore, #tpu.memory_space<semaphore_mem>>)
      %c1_i32_182 = arith.constant 1 : i32
      %c0_i32_183 = arith.constant 0 : i32
      %261 = tpu.memref_slice %arg3[%255, %c0_i32_183] : memref<16x128xf32, #tpu.memory_space<any>> -> memref<1x128xf32, #tpu.memory_space<any>>
      %c6_i32_184 = arith.constant 6 : i32
      %c0_i32_185 = arith.constant 0 : i32
      %262 = tpu.memref_slice %arg9[%124, %c6_i32_184, %c0_i32_185] : memref<2x8x128xf32, #tpu.memory_space<vmem>> -> memref<1x1x128xf32, #tpu.memory_space<vmem>>
      %263 = tpu.memref_squeeze %262 : memref<1x1x128xf32, #tpu.memory_space<vmem>> -> memref<1x128xf32, #tpu.memory_space<vmem>>
      %264 = tpu.memref_slice %arg10[%124, %c1_i32_182] : memref<2x2x!tpu.dma_semaphore, #tpu.memory_space<semaphore_mem>> -> memref<1x1x!tpu.dma_semaphore, #tpu.memory_space<semaphore_mem>>
      %265 = tpu.memref_squeeze %264 : memref<1x1x!tpu.dma_semaphore, #tpu.memory_space<semaphore_mem>> -> memref<!tpu.dma_semaphore, #tpu.memory_space<semaphore_mem>>
      tpu.enqueue_dma source(%261 : memref<1x128xf32, #tpu.memory_space<any>>) target(%263 : memref<1x128xf32, #tpu.memory_space<vmem>>) target_semaphore(%265 : memref<!tpu.dma_semaphore, #tpu.memory_space<semaphore_mem>>)
      %c7_i32_186 = arith.constant 7 : i32
      %266 = arith.addi %125, %c7_i32_186 : i32
      %c1_i32_187 = arith.constant 1 : i32
      %267 = arith.minsi %266, %c1_i32_187 : i32
      %c8_i32_188 = arith.constant 8 : i32
      %268 = arith.muli %267, %c8_i32_188 : i32
      %269 = arith.index_cast %266 : i32 to index
      %270 = memref.load %arg1[%269] : memref<8xi32, #tpu.memory_space<smem>>
      %271 = arith.addi %268, %270 : i32
      %c8_i32_189 = arith.constant 8 : i32
      %272 = arith.muli %267, %c8_i32_189 : i32
      %273 = arith.index_cast %266 : i32 to index
      %274 = memref.load %arg2[%273] : memref<8xi32, #tpu.memory_space<smem>>
      %275 = arith.addi %272, %274 : i32
      %c0_i32_190 = arith.constant 0 : i32
      %c0_i32_191 = arith.constant 0 : i32
      %276 = tpu.memref_slice %arg3[%271, %c0_i32_191] : memref<16x128xf32, #tpu.memory_space<any>> -> memref<1x128xf32, #tpu.memory_space<any>>
      %c7_i32_192 = arith.constant 7 : i32
      %c0_i32_193 = arith.constant 0 : i32
      %277 = tpu.memref_slice %arg8[%124, %c7_i32_192, %c0_i32_193] : memref<2x8x128xf32, #tpu.memory_space<vmem>> -> memref<1x1x128xf32, #tpu.memory_space<vmem>>
      %278 = tpu.memref_squeeze %277 : memref<1x1x128xf32, #tpu.memory_space<vmem>> -> memref<1x128xf32, #tpu.memory_space<vmem>>
      %279 = tpu.memref_slice %arg10[%124, %c0_i32_190] : memref<2x2x!tpu.dma_semaphore, #tpu.memory_space<semaphore_mem>> -> memref<1x1x!tpu.dma_semaphore, #tpu.memory_space<semaphore_mem>>
      %280 = tpu.memref_squeeze %279 : memref<1x1x!tpu.dma_semaphore, #tpu.memory_space<semaphore_mem>> -> memref<!tpu.dma_semaphore, #tpu.memory_space<semaphore_mem>>
      tpu.enqueue_dma source(%276 : memref<1x128xf32, #tpu.memory_space<any>>) target(%278 : memref<1x128xf32, #tpu.memory_space<vmem>>) target_semaphore(%280 : memref<!tpu.dma_semaphore, #tpu.memory_space<semaphore_mem>>)
      %c1_i32_194 = arith.constant 1 : i32
      %c0_i32_195 = arith.constant 0 : i32
      %281 = tpu.memref_slice %arg3[%275, %c0_i32_195] : memref<16x128xf32, #tpu.memory_space<any>> -> memref<1x128xf32, #tpu.memory_space<any>>
      %c7_i32_196 = arith.constant 7 : i32
      %c0_i32_197 = arith.constant 0 : i32
      %282 = tpu.memref_slice %arg9[%124, %c7_i32_196, %c0_i32_197] : memref<2x8x128xf32, #tpu.memory_space<vmem>> -> memref<1x1x128xf32, #tpu.memory_space<vmem>>
      %283 = tpu.memref_squeeze %282 : memref<1x1x128xf32, #tpu.memory_space<vmem>> -> memref<1x128xf32, #tpu.memory_space<vmem>>
      %284 = tpu.memref_slice %arg10[%124, %c1_i32_194] : memref<2x2x!tpu.dma_semaphore, #tpu.memory_space<semaphore_mem>> -> memref<1x1x!tpu.dma_semaphore, #tpu.memory_space<semaphore_mem>>
      %285 = tpu.memref_squeeze %284 : memref<1x1x!tpu.dma_semaphore, #tpu.memory_space<semaphore_mem>> -> memref<!tpu.dma_semaphore, #tpu.memory_space<semaphore_mem>>
      tpu.enqueue_dma source(%281 : memref<1x128xf32, #tpu.memory_space<any>>) target(%283 : memref<1x128xf32, #tpu.memory_space<vmem>>) target_semaphore(%285 : memref<!tpu.dma_semaphore, #tpu.memory_space<semaphore_mem>>)
    } else {
    }
    %c0_i32_8 = arith.constant 0 : i32
    %c0_i32_9 = arith.constant 0 : i32
    %c0_i32_10 = arith.constant 0 : i32
    %17 = tpu.memref_slice %arg3[%c0_i32_9, %c0_i32_10] : memref<16x128xf32, #tpu.memory_space<any>> -> memref<1x128xf32, #tpu.memory_space<any>>
    %c0_i32_11 = arith.constant 0 : i32
    %c0_i32_12 = arith.constant 0 : i32
    %18 = tpu.memref_slice %arg8[%9, %c0_i32_11, %c0_i32_12] : memref<2x8x128xf32, #tpu.memory_space<vmem>> -> memref<1x1x128xf32, #tpu.memory_space<vmem>>
    %19 = tpu.memref_squeeze %18 : memref<1x1x128xf32, #tpu.memory_space<vmem>> -> memref<1x128xf32, #tpu.memory_space<vmem>>
    %20 = tpu.memref_slice %arg10[%9, %c0_i32_8] : memref<2x2x!tpu.dma_semaphore, #tpu.memory_space<semaphore_mem>> -> memref<1x1x!tpu.dma_semaphore, #tpu.memory_space<semaphore_mem>>
    %21 = tpu.memref_squeeze %20 : memref<1x1x!tpu.dma_semaphore, #tpu.memory_space<semaphore_mem>> -> memref<!tpu.dma_semaphore, #tpu.memory_space<semaphore_mem>>
    tpu.wait_dma2 semaphore(%21 : memref<!tpu.dma_semaphore, #tpu.memory_space<semaphore_mem>>) src(%17 : memref<1x128xf32, #tpu.memory_space<any>>) dst(%19 : memref<1x128xf32, #tpu.memory_space<vmem>>)
    %c1_i32_13 = arith.constant 1 : i32
    %c0_i32_14 = arith.constant 0 : i32
    %c0_i32_15 = arith.constant 0 : i32
    %22 = tpu.memref_slice %arg3[%c0_i32_14, %c0_i32_15] : memref<16x128xf32, #tpu.memory_space<any>> -> memref<1x128xf32, #tpu.memory_space<any>>
    %c0_i32_16 = arith.constant 0 : i32
    %c0_i32_17 = arith.constant 0 : i32
    %23 = tpu.memref_slice %arg9[%9, %c0_i32_16, %c0_i32_17] : memref<2x8x128xf32, #tpu.memory_space<vmem>> -> memref<1x1x128xf32, #tpu.memory_space<vmem>>
    %24 = tpu.memref_squeeze %23 : memref<1x1x128xf32, #tpu.memory_space<vmem>> -> memref<1x128xf32, #tpu.memory_space<vmem>>
    %25 = tpu.memref_slice %arg10[%9, %c1_i32_13] : memref<2x2x!tpu.dma_semaphore, #tpu.memory_space<semaphore_mem>> -> memref<1x1x!tpu.dma_semaphore, #tpu.memory_space<semaphore_mem>>
    %26 = tpu.memref_squeeze %25 : memref<1x1x!tpu.dma_semaphore, #tpu.memory_space<semaphore_mem>> -> memref<!tpu.dma_semaphore, #tpu.memory_space<semaphore_mem>>
    tpu.wait_dma2 semaphore(%26 : memref<!tpu.dma_semaphore, #tpu.memory_space<semaphore_mem>>) src(%22 : memref<1x128xf32, #tpu.memory_space<any>>) dst(%24 : memref<1x128xf32, #tpu.memory_space<vmem>>)
    %c0_i32_18 = arith.constant 0 : i32
    %c0_i32_19 = arith.constant 0 : i32
    %c0_i32_20 = arith.constant 0 : i32
    %27 = tpu.memref_slice %arg3[%c0_i32_19, %c0_i32_20] : memref<16x128xf32, #tpu.memory_space<any>> -> memref<1x128xf32, #tpu.memory_space<any>>
    %c1_i32_21 = arith.constant 1 : i32
    %c0_i32_22 = arith.constant 0 : i32
    %28 = tpu.memref_slice %arg8[%9, %c1_i32_21, %c0_i32_22] : memref<2x8x128xf32, #tpu.memory_space<vmem>> -> memref<1x1x128xf32, #tpu.memory_space<vmem>>
    %29 = tpu.memref_squeeze %28 : memref<1x1x128xf32, #tpu.memory_space<vmem>> -> memref<1x128xf32, #tpu.memory_space<vmem>>
    %30 = tpu.memref_slice %arg10[%9, %c0_i32_18] : memref<2x2x!tpu.dma_semaphore, #tpu.memory_space<semaphore_mem>> -> memref<1x1x!tpu.dma_semaphore, #tpu.memory_space<semaphore_mem>>
    %31 = tpu.memref_squeeze %30 : memref<1x1x!tpu.dma_semaphore, #tpu.memory_space<semaphore_mem>> -> memref<!tpu.dma_semaphore, #tpu.memory_space<semaphore_mem>>
    tpu.wait_dma2 semaphore(%31 : memref<!tpu.dma_semaphore, #tpu.memory_space<semaphore_mem>>) src(%27 : memref<1x128xf32, #tpu.memory_space<any>>) dst(%29 : memref<1x128xf32, #tpu.memory_space<vmem>>)
    %c1_i32_23 = arith.constant 1 : i32
    %c0_i32_24 = arith.constant 0 : i32
    %c0_i32_25 = arith.constant 0 : i32
    %32 = tpu.memref_slice %arg3[%c0_i32_24, %c0_i32_25] : memref<16x128xf32, #tpu.memory_space<any>> -> memref<1x128xf32, #tpu.memory_space<any>>
    %c1_i32_26 = arith.constant 1 : i32
    %c0_i32_27 = arith.constant 0 : i32
    %33 = tpu.memref_slice %arg9[%9, %c1_i32_26, %c0_i32_27] : memref<2x8x128xf32, #tpu.memory_space<vmem>> -> memref<1x1x128xf32, #tpu.memory_space<vmem>>
    %34 = tpu.memref_squeeze %33 : memref<1x1x128xf32, #tpu.memory_space<vmem>> -> memref<1x128xf32, #tpu.memory_space<vmem>>
    %35 = tpu.memref_slice %arg10[%9, %c1_i32_23] : memref<2x2x!tpu.dma_semaphore, #tpu.memory_space<semaphore_mem>> -> memref<1x1x!tpu.dma_semaphore, #tpu.memory_space<semaphore_mem>>
    %36 = tpu.memref_squeeze %35 : memref<1x1x!tpu.dma_semaphore, #tpu.memory_space<semaphore_mem>> -> memref<!tpu.dma_semaphore, #tpu.memory_space<semaphore_mem>>
    tpu.wait_dma2 semaphore(%36 : memref<!tpu.dma_semaphore, #tpu.memory_space<semaphore_mem>>) src(%32 : memref<1x128xf32, #tpu.memory_space<any>>) dst(%34 : memref<1x128xf32, #tpu.memory_space<vmem>>)
    %c0_i32_28 = arith.constant 0 : i32
    %c0_i32_29 = arith.constant 0 : i32
    %c0_i32_30 = arith.constant 0 : i32
    %37 = tpu.memref_slice %arg3[%c0_i32_29, %c0_i32_30] : memref<16x128xf32, #tpu.memory_space<any>> -> memref<1x128xf32, #tpu.memory_space<any>>
    %c2_i32_31 = arith.constant 2 : i32
    %c0_i32_32 = arith.constant 0 : i32
    %38 = tpu.memref_slice %arg8[%9, %c2_i32_31, %c0_i32_32] : memref<2x8x128xf32, #tpu.memory_space<vmem>> -> memref<1x1x128xf32, #tpu.memory_space<vmem>>
    %39 = tpu.memref_squeeze %38 : memref<1x1x128xf32, #tpu.memory_space<vmem>> -> memref<1x128xf32, #tpu.memory_space<vmem>>
    %40 = tpu.memref_slice %arg10[%9, %c0_i32_28] : memref<2x2x!tpu.dma_semaphore, #tpu.memory_space<semaphore_mem>> -> memref<1x1x!tpu.dma_semaphore, #tpu.memory_space<semaphore_mem>>
    %41 = tpu.memref_squeeze %40 : memref<1x1x!tpu.dma_semaphore, #tpu.memory_space<semaphore_mem>> -> memref<!tpu.dma_semaphore, #tpu.memory_space<semaphore_mem>>
    tpu.wait_dma2 semaphore(%41 : memref<!tpu.dma_semaphore, #tpu.memory_space<semaphore_mem>>) src(%37 : memref<1x128xf32, #tpu.memory_space<any>>) dst(%39 : memref<1x128xf32, #tpu.memory_space<vmem>>)
    %c1_i32_33 = arith.constant 1 : i32
    %c0_i32_34 = arith.constant 0 : i32
    %c0_i32_35 = arith.constant 0 : i32
    %42 = tpu.memref_slice %arg3[%c0_i32_34, %c0_i32_35] : memref<16x128xf32, #tpu.memory_space<any>> -> memref<1x128xf32, #tpu.memory_space<any>>
    %c2_i32_36 = arith.constant 2 : i32
    %c0_i32_37 = arith.constant 0 : i32
    %43 = tpu.memref_slice %arg9[%9, %c2_i32_36, %c0_i32_37] : memref<2x8x128xf32, #tpu.memory_space<vmem>> -> memref<1x1x128xf32, #tpu.memory_space<vmem>>
    %44 = tpu.memref_squeeze %43 : memref<1x1x128xf32, #tpu.memory_space<vmem>> -> memref<1x128xf32, #tpu.memory_space<vmem>>
    %45 = tpu.memref_slice %arg10[%9, %c1_i32_33] : memref<2x2x!tpu.dma_semaphore, #tpu.memory_space<semaphore_mem>> -> memref<1x1x!tpu.dma_semaphore, #tpu.memory_space<semaphore_mem>>
    %46 = tpu.memref_squeeze %45 : memref<1x1x!tpu.dma_semaphore, #tpu.memory_space<semaphore_mem>> -> memref<!tpu.dma_semaphore, #tpu.memory_space<semaphore_mem>>
    tpu.wait_dma2 semaphore(%46 : memref<!tpu.dma_semaphore, #tpu.memory_space<semaphore_mem>>) src(%42 : memref<1x128xf32, #tpu.memory_space<any>>) dst(%44 : memref<1x128xf32, #tpu.memory_space<vmem>>)
    %c0_i32_38 = arith.constant 0 : i32
    %c0_i32_39 = arith.constant 0 : i32
    %c0_i32_40 = arith.constant 0 : i32
    %47 = tpu.memref_slice %arg3[%c0_i32_39, %c0_i32_40] : memref<16x128xf32, #tpu.memory_space<any>> -> memref<1x128xf32, #tpu.memory_space<any>>
    %c3_i32 = arith.constant 3 : i32
    %c0_i32_41 = arith.constant 0 : i32
    %48 = tpu.memref_slice %arg8[%9, %c3_i32, %c0_i32_41] : memref<2x8x128xf32, #tpu.memory_space<vmem>> -> memref<1x1x128xf32, #tpu.memory_space<vmem>>
    %49 = tpu.memref_squeeze %48 : memref<1x1x128xf32, #tpu.memory_space<vmem>> -> memref<1x128xf32, #tpu.memory_space<vmem>>
    %50 = tpu.memref_slice %arg10[%9, %c0_i32_38] : memref<2x2x!tpu.dma_semaphore, #tpu.memory_space<semaphore_mem>> -> memref<1x1x!tpu.dma_semaphore, #tpu.memory_space<semaphore_mem>>
    %51 = tpu.memref_squeeze %50 : memref<1x1x!tpu.dma_semaphore, #tpu.memory_space<semaphore_mem>> -> memref<!tpu.dma_semaphore, #tpu.memory_space<semaphore_mem>>
    tpu.wait_dma2 semaphore(%51 : memref<!tpu.dma_semaphore, #tpu.memory_space<semaphore_mem>>) src(%47 : memref<1x128xf32, #tpu.memory_space<any>>) dst(%49 : memref<1x128xf32, #tpu.memory_space<vmem>>)
    %c1_i32_42 = arith.constant 1 : i32
    %c0_i32_43 = arith.constant 0 : i32
    %c0_i32_44 = arith.constant 0 : i32
    %52 = tpu.memref_slice %arg3[%c0_i32_43, %c0_i32_44] : memref<16x128xf32, #tpu.memory_space<any>> -> memref<1x128xf32, #tpu.memory_space<any>>
    %c3_i32_45 = arith.constant 3 : i32
    %c0_i32_46 = arith.constant 0 : i32
    %53 = tpu.memref_slice %arg9[%9, %c3_i32_45, %c0_i32_46] : memref<2x8x128xf32, #tpu.memory_space<vmem>> -> memref<1x1x128xf32, #tpu.memory_space<vmem>>
    %54 = tpu.memref_squeeze %53 : memref<1x1x128xf32, #tpu.memory_space<vmem>> -> memref<1x128xf32, #tpu.memory_space<vmem>>
    %55 = tpu.memref_slice %arg10[%9, %c1_i32_42] : memref<2x2x!tpu.dma_semaphore, #tpu.memory_space<semaphore_mem>> -> memref<1x1x!tpu.dma_semaphore, #tpu.memory_space<semaphore_mem>>
    %56 = tpu.memref_squeeze %55 : memref<1x1x!tpu.dma_semaphore, #tpu.memory_space<semaphore_mem>> -> memref<!tpu.dma_semaphore, #tpu.memory_space<semaphore_mem>>
    tpu.wait_dma2 semaphore(%56 : memref<!tpu.dma_semaphore, #tpu.memory_space<semaphore_mem>>) src(%52 : memref<1x128xf32, #tpu.memory_space<any>>) dst(%54 : memref<1x128xf32, #tpu.memory_space<vmem>>)
    %c0_i32_47 = arith.constant 0 : i32
    %c0_i32_48 = arith.constant 0 : i32
    %c0_i32_49 = arith.constant 0 : i32
    %57 = tpu.memref_slice %arg3[%c0_i32_48, %c0_i32_49] : memref<16x128xf32, #tpu.memory_space<any>> -> memref<1x128xf32, #tpu.memory_space<any>>
    %c4_i32 = arith.constant 4 : i32
    %c0_i32_50 = arith.constant 0 : i32
    %58 = tpu.memref_slice %arg8[%9, %c4_i32, %c0_i32_50] : memref<2x8x128xf32, #tpu.memory_space<vmem>> -> memref<1x1x128xf32, #tpu.memory_space<vmem>>
    %59 = tpu.memref_squeeze %58 : memref<1x1x128xf32, #tpu.memory_space<vmem>> -> memref<1x128xf32, #tpu.memory_space<vmem>>
    %60 = tpu.memref_slice %arg10[%9, %c0_i32_47] : memref<2x2x!tpu.dma_semaphore, #tpu.memory_space<semaphore_mem>> -> memref<1x1x!tpu.dma_semaphore, #tpu.memory_space<semaphore_mem>>
    %61 = tpu.memref_squeeze %60 : memref<1x1x!tpu.dma_semaphore, #tpu.memory_space<semaphore_mem>> -> memref<!tpu.dma_semaphore, #tpu.memory_space<semaphore_mem>>
    tpu.wait_dma2 semaphore(%61 : memref<!tpu.dma_semaphore, #tpu.memory_space<semaphore_mem>>) src(%57 : memref<1x128xf32, #tpu.memory_space<any>>) dst(%59 : memref<1x128xf32, #tpu.memory_space<vmem>>)
    %c1_i32_51 = arith.constant 1 : i32
    %c0_i32_52 = arith.constant 0 : i32
    %c0_i32_53 = arith.constant 0 : i32
    %62 = tpu.memref_slice %arg3[%c0_i32_52, %c0_i32_53] : memref<16x128xf32, #tpu.memory_space<any>> -> memref<1x128xf32, #tpu.memory_space<any>>
    %c4_i32_54 = arith.constant 4 : i32
    %c0_i32_55 = arith.constant 0 : i32
    %63 = tpu.memref_slice %arg9[%9, %c4_i32_54, %c0_i32_55] : memref<2x8x128xf32, #tpu.memory_space<vmem>> -> memref<1x1x128xf32, #tpu.memory_space<vmem>>
    %64 = tpu.memref_squeeze %63 : memref<1x1x128xf32, #tpu.memory_space<vmem>> -> memref<1x128xf32, #tpu.memory_space<vmem>>
    %65 = tpu.memref_slice %arg10[%9, %c1_i32_51] : memref<2x2x!tpu.dma_semaphore, #tpu.memory_space<semaphore_mem>> -> memref<1x1x!tpu.dma_semaphore, #tpu.memory_space<semaphore_mem>>
    %66 = tpu.memref_squeeze %65 : memref<1x1x!tpu.dma_semaphore, #tpu.memory_space<semaphore_mem>> -> memref<!tpu.dma_semaphore, #tpu.memory_space<semaphore_mem>>
    tpu.wait_dma2 semaphore(%66 : memref<!tpu.dma_semaphore, #tpu.memory_space<semaphore_mem>>) src(%62 : memref<1x128xf32, #tpu.memory_space<any>>) dst(%64 : memref<1x128xf32, #tpu.memory_space<vmem>>)
    %c0_i32_56 = arith.constant 0 : i32
    %c0_i32_57 = arith.constant 0 : i32
    %c0_i32_58 = arith.constant 0 : i32
    %67 = tpu.memref_slice %arg3[%c0_i32_57, %c0_i32_58] : memref<16x128xf32, #tpu.memory_space<any>> -> memref<1x128xf32, #tpu.memory_space<any>>
    %c5_i32 = arith.constant 5 : i32
    %c0_i32_59 = arith.constant 0 : i32
    %68 = tpu.memref_slice %arg8[%9, %c5_i32, %c0_i32_59] : memref<2x8x128xf32, #tpu.memory_space<vmem>> -> memref<1x1x128xf32, #tpu.memory_space<vmem>>
    %69 = tpu.memref_squeeze %68 : memref<1x1x128xf32, #tpu.memory_space<vmem>> -> memref<1x128xf32, #tpu.memory_space<vmem>>
    %70 = tpu.memref_slice %arg10[%9, %c0_i32_56] : memref<2x2x!tpu.dma_semaphore, #tpu.memory_space<semaphore_mem>> -> memref<1x1x!tpu.dma_semaphore, #tpu.memory_space<semaphore_mem>>
    %71 = tpu.memref_squeeze %70 : memref<1x1x!tpu.dma_semaphore, #tpu.memory_space<semaphore_mem>> -> memref<!tpu.dma_semaphore, #tpu.memory_space<semaphore_mem>>
    tpu.wait_dma2 semaphore(%71 : memref<!tpu.dma_semaphore, #tpu.memory_space<semaphore_mem>>) src(%67 : memref<1x128xf32, #tpu.memory_space<any>>) dst(%69 : memref<1x128xf32, #tpu.memory_space<vmem>>)
    %c1_i32_60 = arith.constant 1 : i32
    %c0_i32_61 = arith.constant 0 : i32
    %c0_i32_62 = arith.constant 0 : i32
    %72 = tpu.memref_slice %arg3[%c0_i32_61, %c0_i32_62] : memref<16x128xf32, #tpu.memory_space<any>> -> memref<1x128xf32, #tpu.memory_space<any>>
    %c5_i32_63 = arith.constant 5 : i32
    %c0_i32_64 = arith.constant 0 : i32
    %73 = tpu.memref_slice %arg9[%9, %c5_i32_63, %c0_i32_64] : memref<2x8x128xf32, #tpu.memory_space<vmem>> -> memref<1x1x128xf32, #tpu.memory_space<vmem>>
    %74 = tpu.memref_squeeze %73 : memref<1x1x128xf32, #tpu.memory_space<vmem>> -> memref<1x128xf32, #tpu.memory_space<vmem>>
    %75 = tpu.memref_slice %arg10[%9, %c1_i32_60] : memref<2x2x!tpu.dma_semaphore, #tpu.memory_space<semaphore_mem>> -> memref<1x1x!tpu.dma_semaphore, #tpu.memory_space<semaphore_mem>>
    %76 = tpu.memref_squeeze %75 : memref<1x1x!tpu.dma_semaphore, #tpu.memory_space<semaphore_mem>> -> memref<!tpu.dma_semaphore, #tpu.memory_space<semaphore_mem>>
    tpu.wait_dma2 semaphore(%76 : memref<!tpu.dma_semaphore, #tpu.memory_space<semaphore_mem>>) src(%72 : memref<1x128xf32, #tpu.memory_space<any>>) dst(%74 : memref<1x128xf32, #tpu.memory_space<vmem>>)
    %c0_i32_65 = arith.constant 0 : i32
    %c0_i32_66 = arith.constant 0 : i32
    %c0_i32_67 = arith.constant 0 : i32
    %77 = tpu.memref_slice %arg3[%c0_i32_66, %c0_i32_67] : memref<16x128xf32, #tpu.memory_space<any>> -> memref<1x128xf32, #tpu.memory_space<any>>
    %c6_i32 = arith.constant 6 : i32
    %c0_i32_68 = arith.constant 0 : i32
    %78 = tpu.memref_slice %arg8[%9, %c6_i32, %c0_i32_68] : memref<2x8x128xf32, #tpu.memory_space<vmem>> -> memref<1x1x128xf32, #tpu.memory_space<vmem>>
    %79 = tpu.memref_squeeze %78 : memref<1x1x128xf32, #tpu.memory_space<vmem>> -> memref<1x128xf32, #tpu.memory_space<vmem>>
    %80 = tpu.memref_slice %arg10[%9, %c0_i32_65] : memref<2x2x!tpu.dma_semaphore, #tpu.memory_space<semaphore_mem>> -> memref<1x1x!tpu.dma_semaphore, #tpu.memory_space<semaphore_mem>>
    %81 = tpu.memref_squeeze %80 : memref<1x1x!tpu.dma_semaphore, #tpu.memory_space<semaphore_mem>> -> memref<!tpu.dma_semaphore, #tpu.memory_space<semaphore_mem>>
    tpu.wait_dma2 semaphore(%81 : memref<!tpu.dma_semaphore, #tpu.memory_space<semaphore_mem>>) src(%77 : memref<1x128xf32, #tpu.memory_space<any>>) dst(%79 : memref<1x128xf32, #tpu.memory_space<vmem>>)
    %c1_i32_69 = arith.constant 1 : i32
    %c0_i32_70 = arith.constant 0 : i32
    %c0_i32_71 = arith.constant 0 : i32
    %82 = tpu.memref_slice %arg3[%c0_i32_70, %c0_i32_71] : memref<16x128xf32, #tpu.memory_space<any>> -> memref<1x128xf32, #tpu.memory_space<any>>
    %c6_i32_72 = arith.constant 6 : i32
    %c0_i32_73 = arith.constant 0 : i32
    %83 = tpu.memref_slice %arg9[%9, %c6_i32_72, %c0_i32_73] : memref<2x8x128xf32, #tpu.memory_space<vmem>> -> memref<1x1x128xf32, #tpu.memory_space<vmem>>
    %84 = tpu.memref_squeeze %83 : memref<1x1x128xf32, #tpu.memory_space<vmem>> -> memref<1x128xf32, #tpu.memory_space<vmem>>
    %85 = tpu.memref_slice %arg10[%9, %c1_i32_69] : memref<2x2x!tpu.dma_semaphore, #tpu.memory_space<semaphore_mem>> -> memref<1x1x!tpu.dma_semaphore, #tpu.memory_space<semaphore_mem>>
    %86 = tpu.memref_squeeze %85 : memref<1x1x!tpu.dma_semaphore, #tpu.memory_space<semaphore_mem>> -> memref<!tpu.dma_semaphore, #tpu.memory_space<semaphore_mem>>
    tpu.wait_dma2 semaphore(%86 : memref<!tpu.dma_semaphore, #tpu.memory_space<semaphore_mem>>) src(%82 : memref<1x128xf32, #tpu.memory_space<any>>) dst(%84 : memref<1x128xf32, #tpu.memory_space<vmem>>)
    %c0_i32_74 = arith.constant 0 : i32
    %c0_i32_75 = arith.constant 0 : i32
    %c0_i32_76 = arith.constant 0 : i32
    %87 = tpu.memref_slice %arg3[%c0_i32_75, %c0_i32_76] : memref<16x128xf32, #tpu.memory_space<any>> -> memref<1x128xf32, #tpu.memory_space<any>>
    %c7_i32 = arith.constant 7 : i32
    %c0_i32_77 = arith.constant 0 : i32
    %88 = tpu.memref_slice %arg8[%9, %c7_i32, %c0_i32_77] : memref<2x8x128xf32, #tpu.memory_space<vmem>> -> memref<1x1x128xf32, #tpu.memory_space<vmem>>
    %89 = tpu.memref_squeeze %88 : memref<1x1x128xf32, #tpu.memory_space<vmem>> -> memref<1x128xf32, #tpu.memory_space<vmem>>
    %90 = tpu.memref_slice %arg10[%9, %c0_i32_74] : memref<2x2x!tpu.dma_semaphore, #tpu.memory_space<semaphore_mem>> -> memref<1x1x!tpu.dma_semaphore, #tpu.memory_space<semaphore_mem>>
    %91 = tpu.memref_squeeze %90 : memref<1x1x!tpu.dma_semaphore, #tpu.memory_space<semaphore_mem>> -> memref<!tpu.dma_semaphore, #tpu.memory_space<semaphore_mem>>
    tpu.wait_dma2 semaphore(%91 : memref<!tpu.dma_semaphore, #tpu.memory_space<semaphore_mem>>) src(%87 : memref<1x128xf32, #tpu.memory_space<any>>) dst(%89 : memref<1x128xf32, #tpu.memory_space<vmem>>)
    %c1_i32_78 = arith.constant 1 : i32
    %c0_i32_79 = arith.constant 0 : i32
    %c0_i32_80 = arith.constant 0 : i32
    %92 = tpu.memref_slice %arg3[%c0_i32_79, %c0_i32_80] : memref<16x128xf32, #tpu.memory_space<any>> -> memref<1x128xf32, #tpu.memory_space<any>>
    %c7_i32_81 = arith.constant 7 : i32
    %c0_i32_82 = arith.constant 0 : i32
    %93 = tpu.memref_slice %arg9[%9, %c7_i32_81, %c0_i32_82] : memref<2x8x128xf32, #tpu.memory_space<vmem>> -> memref<1x1x128xf32, #tpu.memory_space<vmem>>
    %94 = tpu.memref_squeeze %93 : memref<1x1x128xf32, #tpu.memory_space<vmem>> -> memref<1x128xf32, #tpu.memory_space<vmem>>
    %95 = tpu.memref_slice %arg10[%9, %c1_i32_78] : memref<2x2x!tpu.dma_semaphore, #tpu.memory_space<semaphore_mem>> -> memref<1x1x!tpu.dma_semaphore, #tpu.memory_space<semaphore_mem>>
    %96 = tpu.memref_squeeze %95 : memref<1x1x!tpu.dma_semaphore, #tpu.memory_space<semaphore_mem>> -> memref<!tpu.dma_semaphore, #tpu.memory_space<semaphore_mem>>
    tpu.wait_dma2 semaphore(%96 : memref<!tpu.dma_semaphore, #tpu.memory_space<semaphore_mem>>) src(%92 : memref<1x128xf32, #tpu.memory_space<any>>) dst(%94 : memref<1x128xf32, #tpu.memory_space<vmem>>)
    %97 = arith.index_cast %9 : i32 to index
    %c0 = arith.constant 0 : index
    %c0_83 = arith.constant 0 : index
    %98 = vector.load %arg8[%97, %c0, %c0_83] : memref<2x8x128xf32, #tpu.memory_space<vmem>>, vector<1x8x128xf32>
    %99 = vector.shape_cast %98 : vector<1x8x128xf32> to vector<8x128xf32>
    %100 = arith.index_cast %9 : i32 to index
    %c0_84 = arith.constant 0 : index
    %c0_85 = arith.constant 0 : index
    %101 = vector.load %arg9[%100, %c0_84, %c0_85] : memref<2x8x128xf32, #tpu.memory_space<vmem>>, vector<1x8x128xf32>
    %102 = vector.shape_cast %101 : vector<1x8x128xf32> to vector<8x128xf32>
    %c0_86 = arith.constant 0 : index
    %c0_87 = arith.constant 0 : index
    %103 = vector.load %arg4[%c0_86, %c0_87] : memref<8x1xf32, #tpu.memory_space<vmem>>, vector<8x1xf32>
    %104 = vector.broadcast %103 : vector<8x1xf32> to vector<8x128xf32>
    %105 = arith.mulf %102, %104 : vector<8x128xf32>
    %106 = arith.addf %99, %105 : vector<8x128xf32>
    %c0_88 = arith.constant 0 : index
    %c0_89 = arith.constant 0 : index
    %107 = vector.load %arg5[%c0_88, %c0_89] : memref<128x128xf32, #tpu.memory_space<vmem>>, vector<128x128xf32>
    %cst = arith.constant dense<0.000000e+00> : vector<8x128xf32>
    %108 = tpu.matmul %106, %107, %cst {dimension_numbers = #tpu.dot_dimension_numbers<[1], [0], [0], [1], [0, 0, 1, 1], [], []>} : vector<8x128xf32>, vector<128x128xf32>, vector<8x128xf32> -> vector<8x128xf32>
    %c0_90 = arith.constant 0 : index
    %c0_91 = arith.constant 0 : index
    %109 = vector.load %arg6[%c0_90, %c0_91] : memref<1x128xf32, #tpu.memory_space<vmem>>, vector<1x128xf32>
    %110 = vector.broadcast %109 : vector<1x128xf32> to vector<8x128xf32>
    %111 = arith.addf %108, %110 : vector<8x128xf32>
    %c0_92 = arith.constant 0 : index
    %c0_93 = arith.constant 0 : index
    %112 = vector.load %arg7[%c0_92, %c0_93] : memref<8x128xf32, #tpu.memory_space<vmem>>, vector<8x128xf32>
    tpu.vector_store %arg7[%c0_92, %c0_93], %111 {strides = array<i32>} : memref<8x128xf32, #tpu.memory_space<vmem>>, vector<8x128xf32>,
    return
  }
  func.func @transform_1(%arg0: i32, %arg1: memref<8xi32, #tpu.memory_space<smem>>, %arg2: memref<8xi32, #tpu.memory_space<smem>>) -> (i32, i32) {
    %c0_i32 = arith.constant 0 : i32
    %c0_i32_0 = arith.constant 0 : i32
    return %arg0, %c0_i32 : i32, i32
  }
  func.func @transform_2(%arg0: i32, %arg1: memref<8xi32, #tpu.memory_space<smem>>, %arg2: memref<8xi32, #tpu.memory_space<smem>>) -> (i32, i32) {
    %c0_i32 = arith.constant 0 : i32
    %c0_i32_0 = arith.constant 0 : i32
    %c0_i32_1 = arith.constant 0 : i32
    return %c0_i32, %c0_i32_0 : i32, i32
  }
  func.func @transform_3(%arg0: i32, %arg1: memref<8xi32, #tpu.memory_space<smem>>, %arg2: memref<8xi32, #tpu.memory_space<smem>>) -> (i32, i32) {
    %c0_i32 = arith.constant 0 : i32
    %c0_i32_0 = arith.constant 0 : i32
    %c0_i32_1 = arith.constant 0 : i32
    return %c0_i32, %c0_i32_0 : i32, i32
  }
  func.func @transform_4(%arg0: i32, %arg1: memref<8xi32, #tpu.memory_space<smem>>, %arg2: memref<8xi32, #tpu.memory_space<smem>>) -> (i32, i32) {
    %c0_i32 = arith.constant 0 : i32
    %c0_i32_0 = arith.constant 0 : i32
    return %arg0, %c0_i32 : i32, i32
  }
}

</mosaic_0001>

<bundles_post_ra>
// kernel: tpu_custom_call.1
= control target key start
LH: loop header
LB: loop body
LE: loop exit
PB: predicated region body
PF: predicated region fallthrough
CT: control target
= control target key end

     0   :  { %s1939_s0 = inlined_call_operand.vmem [shape: s32[8], index: 0, kind: input, shape index: {}]   ;;  %s1940_s2 = inlined_call_operand.hbm [shape: f32[16,128], index: 2, kind: input, shape index: {}]   ;;  %s1941_s3 = inlined_call_operand.vmem [shape: f32[8,1], index: 3, kind: input, shape index: {}]   ;;  %s1942_s4 = inlined_call_operand.hbm [shape: f32[128,128], index: 4, kind: input, shape index: {}]   ;;  %s1943_s5 = inlined_call_operand.vmem [shape: f32[1,128], index: 5, kind: input, shape index: {}]   ;;  %s1944_s6 = inlined_call_operand.hbm [shape: f32[8,128], index: 6, kind: output, shape index: {}]   ;;  %s1945_s1 = inlined_call_operand.vmem [shape: s32[8], index: 1, kind: input, shape index: {}]  }
   0x1   :  { %s11_s23 = sshll.u32 %s1939_s0, 4  ;;  %s15_s26 = sshll.u32 %s1945_s1, 4  ;;  %s12_s23 = int_to_ptr.vmem [resolvable:$true] %s11_s23  ;;  %s16_s26 = int_to_ptr.vmem [resolvable:$true] %s15_s26 }
   0x2   :  { %s1157_s27 = scalar_lea.vmem %s12_s23, 16  ;;  %p1162_p1 = scmp.lt.s32.totalorder %s12_s23, %s12_s23 }
   0x3   :  { %p1158_p0 = scmp.ne.s32.totalorder %s12_s23, %s1157_s27  ;;  %p1163_p2 = scmp.lt.s32.totalorder %s1157_s27, %s1157_s27 }
   0x5   :  { %p1164_p3 = por %p1163_p2, %p1162_p1 }
   0x7   :  { %p1165_p4 = pnand %p1164_p3, %p1158_p0 }
   0x9   :  { %1168 = shalt.err (!%p1165_p4)  }
   0xa   :  { %s1625_s28 = smov [#allocation6]   ;;  %s1169_s29 = scalar_lea.vmem %s16_s26, 16 }
   0xb   :  { %14 = dma.vmem_to_smem %s12_s23, 16, %s1625_s28, [#allocation5] }
   0xc   :  { %p1170_p5 = scmp.ne.s32.totalorder %s16_s26, %s1169_s29  ;;  %p1174_p6 = scmp.lt.s32.totalorder %s16_s26, %s16_s26 }
   0xd   :  { %p1175_p7 = scmp.lt.s32.totalorder %s1169_s29, %s1169_s29 }
   0xf   :  { %p1176_p8 = por %p1175_p7, %p1174_p6 }
  0x11   :  { %p1177_p9 = pnand %p1176_p8, %p1170_p5 }
  0x13   :  { %1180 = shalt.err (!%p1177_p9)  }
  0x14   :  { %s1626_s0 = smov [#allocation7]  }
  0x15   :  { %18 = dma.vmem_to_smem %s16_s26, 16, %s1626_s0, [#allocation5] }
  0x16   :  { %1587 = dma.done.wait [#allocation5], 32 }
  0x17   :  { %1588 = vsyncadd [#allocation5], 4294967264 }
  0x18   :  { %20 = sfence }
  0x19   :  { %21 = vsyncpa [#allocation9], 0 }
  0x1a   :  { %22 = vsyncpa [#allocation10], 0  ;;  %s1627_s1 = smov [#allocation8]  }
  0x1b   :  { %s30_s30 = sshll.u32 %s1627_s1, 4  ;;  %s31_s30 = int_to_ptr.vmem [resolvable:$true] %s30_s30 }
  0x1c   :  { %s1189_s7 = scalar_lea.vmem %s31_s30, 2048  ;;  %p1194_p11 = scmp.lt.s32.totalorder %s31_s30, %s31_s30 }
  0x1d   :  { %p1190_p10 = scmp.ne.s32.totalorder %s31_s30, %s1189_s7  ;;  %p1195_p12 = scmp.lt.s32.totalorder %s1189_s7, %s1189_s7 }
  0x1f   :  { %p1196_p13 = por %p1195_p12, %p1194_p11 }
  0x21   :  { %p1197_p0 = pnand %p1196_p13, %p1190_p10 }
  0x23   :  { %1200 = shalt.err (!%p1197_p0)
}
  0x24   :  { %s1628_s8 = smov 128   ;;  %s1629_s9 = smov 8  }
  0x25   :  { %36 = dma.hbm_to_vmem [thread:$0]  %s1942_s4, 2048, %s31_s30, [#allocation9], %s1628_s8, %s1628_s8, %s1629_s9  }
  0x26   :  { %1589 = dma.done.wait [#allocation9], 2048  }
  0x27   :  { %1590 = vsyncadd [#allocation9], 4294965248  ;;  %s54_s12 = sld [smem:[#allocation6]]  ;;  %s1630_s13 = smov [#allocation2]  }
  0x28   :  { %s65_s14 = sshll.u32 %s1630_s13, 4  ;;  %s1696_s15 = sld [smem:[#allocation7]]  ;;  %s1694_s14 = int_to_ptr.vmem [resolvable:$true] %s65_s14 }
  0x29   :  { %s1631_s16 = smov [#allocation3]   ;;  %s1698_s18 = sld [smem:[#allocation6 + $0x1]] }
  0x2a   :  { %s79_s17 = sshll.u32 %s1631_s16, 4  ;;  %s1632_s19 = smov [#allocation2 + $0x1]   ;;  %s1700_s17 = int_to_ptr.vmem [resolvable:$true] %s79_s17 }
  0x2b   :  { %s97_s20 = sshll.u32 %s1632_s19, 4  ;;  %s1702_s21 = sld [smem:[#allocation7 + $0x1]]  ;;  %s1704_s20 = int_to_ptr.vmem [resolvable:$true] %s97_s20 }
  0x2c   :  { %s1633_s22 = smov [#allocation3 + $0x1]   ;;  %s1715_s1 = scalar_lea.hbm %s1940_s2, 256 }
  0x2d   :  { %s980_s4 = sshll.u32 %s54_s12, 4  ;;  %s1706_s23 = sshll.u32 %s1633_s22, 4  ;;  %s112_s23 = int_to_ptr.vmem [resolvable:$true] %s1706_s23 }
  0x2e   :  { %s57_s26 = scalar_lea.hbm %s1940_s2, %s980_s4  ;;  %s981_s27 = sshll.u32 %s1696_s15, 4 }
  0x2f   :  { %s1201_s28 = scalar_lea.hbm %s57_s26, 16  ;;  %p1204_p2 = scmp.lt.s32.totalorder %s57_s26, %s1940_s2 }
  0x30   :  { %p1202_p1 = scmp.ne.s32.totalorder %s57_s26, %s1201_s28  ;;  %p1205_p3 = scmp.lt.s32.totalorder %s1715_s1, %s1201_s28 }
  0x32   :  { %p1206_p4 = por %p1205_p3, %p1204_p2 }
  0x34   :  { %p1207_p5 = pnand %p1206_p4, %p1202_p1 }
  0x36   :  { %1210 = shalt.err (!%p1207_p5)  }
  0x37   :  { %s1211_s8 = scalar_lea.vmem %s1694_s14, 16  ;;  %s1724_s9 = scalar_lea.vmem %s1694_s14, 256 }
  0x38   :  { %p1212_p6 = scmp.ne.s32.totalorder %s1694_s14, %s1211_s8  ;;  %p1216_p7 = scmp.lt.s32.totalorder %s1694_s14, %s1694_s14 }
  0x39   :  { %p1217_p8 = scmp.lt.s32.totalorder %s1724_s9, %s1211_s8 }
  0x3b   :  { %p1218_p9 = por %p1217_p8, %p1216_p7 }
  0x3d   :  { %p1219_p10 = pnand %p1218_p9, %p1212_p6 }
  0x3f   :  { %1222 = shalt.err (!%p1219_p10)  }
  0x40   :  { %68 = dma.hbm_to_vmem [thread:$0]  %s57_s26, 16, %s1694_s14, [#allocation4] }
  0x41   :  { %s70_s12 = scalar_lea.hbm %s1940_s2, %s981_s27  ;;  %s984_s13 = sshll.u32 %s1698_s18, 4 }
  0x42   :  { %s1223_s15 = scalar_lea.hbm %s70_s12, 16  ;;  %p1226_p12 = scmp.lt.s32.totalorder %s70_s12, %s1940_s2 }
  0x43   :  { %p1224_p11 = scmp.ne.s32.totalorder %s70_s12, %s1223_s15  ;;  %p1227_p13 = scmp.lt.s32.totalorder %s1715_s1, %s1223_s15 }
  0x45   :  { %p1228_p0 = por %p1227_p13, %p1226_p12 }
  0x47   :  { %p1229_p1 = pnand %p1228_p0, %p1224_p11 }
  0x49   :  { %1232 = shalt.err (!%p1229_p1)  }
  0x4a   :  { %s1233_s4 = scalar_lea.vmem %s1700_s17, 16  ;;  %s1741_s22 = scalar_lea.vmem %s1700_s17, 256 }
  0x4b   :  { %p1234_p2 = scmp.ne.s32.totalorder %s1700_s17, %s1233_s4  ;;  %p1238_p3 = scmp.lt.s32.totalorder %s1700_s17, %s1700_s17 }
  0x4c   :  { %p1239_p4 = scmp.lt.s32.totalorder %s1741_s22, %s1233_s4 }
  0x4e   :  { %p1240_p5 = por %p1239_p4, %p1238_p3 }
  0x50   :  { %p1241_p6 = pnand %p1240_p5, %p1234_p2 }
  0x52   :  { %1244 = shalt.err (!%p1241_p6)  }
  0x53   :  { %82 = dma.hbm_to_vmem [thread:$0]  %s70_s12, 16, %s1700_s17, [#allocation4 + $0x1] }
  0x54   :  { %s815_s25 = scalar_lea.hbm %s1940_s2, %s984_s13  ;;  %s985_s26 = sshll.u32 %s1702_s21, 4 }
  0x55   :  { %s816_s27 = scalar_lea.hbm %s815_s25, 128  ;;  %s818_s0 = scalar_lea.hbm %s1940_s2, %s985_s26 }
  0x56   :  { %s1267_s30 = scalar_lea.hbm %s815_s25, 144  ;;  %p1248_p8 = scmp.lt.s32.totalorder %s816_s27, %s1940_s2 }
  0x57   :  { %p1246_p7 = scmp.ne.s32.totalorder %s816_s27, %s1267_s30  ;;  %p1249_p9 = scmp.lt.s32.totalorder %s1715_s1, %s1267_s30 }
  0x59   :  { %p1250_p10 = por %p1249_p9, %p1248_p8 }
  0x5b   :  { %p1251_p11 = pnand %p1250_p10, %p1246_p7 }
  0x5d   :  { %1254 = shalt.err (!%p1251_p11)  }
  0x5e   :  { %s1255_s21 = scalar_lea.vmem %s1704_s20, 16  ;;  %p1260_p13 = scmp.lt.s32.totalorder %s1704_s20, %s1694_s14 }
  0x5f   :  { %p1256_p12 = scmp.ne.s32.totalorder %s1704_s20, %s1255_s21  ;;  %p1261_p0 = scmp.lt.s32.totalorder %s1724_s9, %s1255_s21 }
  0x61   :  { %p1262_p1 = por %p1261_p0, %p1260_p13 }
  0x63   :  { %p1263_p2 = pnand %p1262_p1, %p1256_p12 }
  0x65   :  { %1266 = shalt.err (!%p1263_p2)  }
  0x66   :  { %100 = dma.hbm_to_vmem [thread:$0]  %s816_s27, 16, %s1704_s20, [#allocation4] }
  0x67   :  { %s819_s10 = scalar_lea.hbm %s818_s0, 128  ;;  %s1290_s11 = scalar_lea.hbm %s818_s0, 144 }
  0x68   :  { %p1269_p3 = scmp.ne.s32.totalorder %s819_s10, %s1290_s11  ;;  %p1271_p4 = scmp.lt.s32.totalorder %s819_s10, %s1940_s2 }
  0x69   :  { %p1272_p5 = scmp.lt.s32.totalorder %s1715_s1, %s1290_s11 }
  0x6b   :  { %p1273_p6 = por %p1272_p5, %p1271_p4 }
  0x6d   :  { %p1274_p7 = pnand %p1273_p6, %p1269_p3 }
  0x6f   :  { %1277 = shalt.err (!%p1274_p7)  }
  0x70   :  { %s1278_s15 = scalar_lea.vmem %s112_s23, 16  ;;  %p1283_p9 = scmp.lt.s32.totalorder %s112_s23, %s1700_s17 }
  0x71   :  { %p1279_p8 = scmp.ne.s32.totalorder %s112_s23, %s1278_s15  ;;  %p1284_p10 = scmp.lt.s32.totalorder %s1741_s22, %s1278_s15 }
  0x73   :  { %p1285_p11 = por %p1284_p10, %p1283_p9 }
  0x75   :  { %p1286_p12 = pnand %p1285_p11, %p1279_p8 }
  0x77   :  { %1289 = shalt.err (!%p1286_p12)  }
  0x78   :  { %114 = dma.hbm_to_vmem [thread:$0]  %s819_s10, 16, %s112_s23, [#allocation4 + $0x1] }
  0x79   :  { %s986_s20 = sld [smem:[#allocation6 + $0x2]]  ;;  %s1634_s16 = smov [#allocation2 + $0x2]  }
  0x7a   :  { %s129_s19 = sshll.u32 %s1634_s16, 4  ;;  %s987_s4 = sld [smem:[#allocation7 + $0x2]]  ;;  %s130_s19 = int_to_ptr.vmem [resolvable:$true] %s129_s19 }
  0x7b   :  { %s1635_s18 = smov [#allocation3 + $0x2]   ;;  %s1771_s25 = sld [smem:[#allocation6 + $0x3]] }
  0x7c   :  { %s143_s24 = sshll.u32 %s1635_s18, 4  ;;  %s1636_s26 = smov [#allocation2 + $0x3]   ;;  %s1773_s24 = int_to_ptr.vmem [resolvable:$true] %s143_s24 }
  0x7d   :  { %s161_s27 = sshll.u32 %s1636_s26, 4  ;;  %s1775_s28 = sld [smem:[#allocation7 + $0x3]]  ;;  %s1777_s27 = int_to_ptr.vmem [resolvable:$true] %s161_s27 }
  0x7f   :  { %s988_s29 = sshll.u32 %s986_s20, 4 }
  0x80   :  { %s821_s30 = scalar_lea.hbm %s1940_s2, %s988_s29  ;;  %s989_s7 = sshll.u32 %s987_s4, 4 }
  0x81   :  { %s822_s8 = scalar_lea.hbm %s821_s30, 128  ;;  %s824_s11 = scalar_lea.hbm %s1940_s2, %s989_s7 }
  0x82   :  { %s1313_s12 = scalar_lea.hbm %s821_s30, 144  ;;  %p1294_p0 = scmp.lt.s32.totalorder %s822_s8, %s1940_s2 }
  0x83   :  { %p1292_p13 = scmp.ne.s32.totalorder %s822_s8, %s1313_s12  ;;  %p1295_p1 = scmp.lt.s32.totalorder %s1715_s1, %s1313_s12 }
  0x85   :  { %p1296_p2 = por %p1295_p1, %p1294_p0 }
  0x87   :  { %p1297_p3 = pnand %p1296_p2, %p1292_p13 }
  0x89   :  { %1300 = shalt.err (!%p1297_p3)  }
  0x8a   :  { %s1301_s20 = scalar_lea.vmem %s130_s19, 16  ;;  %p1306_p5 = scmp.lt.s32.totalorder %s130_s19, %s1694_s14 }
  0x8b   :  { %p1302_p4 = scmp.ne.s32.totalorder %s130_s19, %s1301_s20  ;;  %p1307_p6 = scmp.lt.s32.totalorder %s1724_s9, %s1301_s20 }
  0x8d   :  { %p1308_p7 = por %p1307_p6, %p1306_p5 }
  0x8f   :  { %p1309_p8 = pnand %p1308_p7, %p1302_p4 }
  0x91   :  { %1312 = shalt.err (!%p1309_p8)  }
  0x92   :  { %132 = dma.hbm_to_vmem [thread:$0]  %s822_s8, 16, %s130_s19, [#allocation4] }
  0x93   :  { %s825_s16 = scalar_lea.hbm %s824_s11, 128  ;;  %s992_s4 = sshll.u32 %s1771_s25, 4 }
  0x94   :  { %s1336_s18 = scalar_lea.hbm %s824_s11, 144  ;;  %p1317_p10 = scmp.lt.s32.totalorder %s825_s16, %s1940_s2 }
  0x95   :  { %p1315_p9 = scmp.ne.s32.totalorder %s825_s16, %s1336_s18  ;;  %p1318_p11 = scmp.lt.s32.totalorder %s1715_s1, %s1336_s18 }
  0x97   :  { %p1319_p12 = por %p1318_p11, %p1317_p10 }
  0x99   :  { %p1320_p13 = pnand %p1319_p12, %p1315_p9 }
  0x9b   :  { %1323 = shalt.err (!%p1320_p13)  }
  0x9c   :  { %s1324_s19 = scalar_lea.vmem %s1773_s24, 16  ;;  %p1329_p1 = scmp.lt.s32.totalorder %s1773_s24, %s1700_s17 }
  0x9d   :  { %p1325_p0 = scmp.ne.s32.totalorder %s1773_s24, %s1324_s19  ;;  %p1330_p2 = scmp.lt.s32.totalorder %s1741_s22, %s1324_s19 }
  0x9f   :  { %p1331_p3 = por %p1330_p2, %p1329_p1 }
  0xa1   :  { %p1332_p4 = pnand %p1331_p3, %p1325_p0 }
  0xa3   :  { %1335 = shalt.err (!%p1332_p4)  }
  0xa4   :  { %146 = dma.hbm_to_vmem [thread:$0]  %s825_s16, 16, %s1773_s24, [#allocation4 + $0x1] }
  0xa5   :  { %s827_s0 = scalar_lea.hbm %s1940_s2, %s992_s4  ;;  %s993_s30 = sshll.u32 %s1775_s28, 4 }
  0xa6   :  { %s828_s7 = scalar_lea.hbm %s827_s0, 128  ;;  %s830_s10 = scalar_lea.hbm %s1940_s2, %s993_s30 }
  0xa7   :  { %s1359_s11 = scalar_lea.hbm %s827_s0, 144  ;;  %p1340_p6 = scmp.lt.s32.totalorder %s828_s7, %s1940_s2 }
  0xa8   :  { %p1338_p5 = scmp.ne.s32.totalorder %s828_s7, %s1359_s11  ;;  %p1341_p7 = scmp.lt.s32.totalorder %s1715_s1, %s1359_s11 }
  0xaa   :  { %p1342_p8 = por %p1341_p7, %p1340_p6 }
  0xac   :  { %p1343_p9 = pnand %p1342_p8, %p1338_p5 }
  0xae   :  { %1346 = shalt.err (!%p1343_p9)  }
  0xaf   :  { %s1347_s24 = scalar_lea.vmem %s1777_s27, 16  ;;  %p1352_p11 = scmp.lt.s32.totalorder %s1777_s27, %s1694_s14 }
  0xb0   :  { %p1348_p10 = scmp.ne.s32.totalorder %s1777_s27, %s1347_s24  ;;  %p1353_p12 = scmp.lt.s32.totalorder %s1724_s9, %s1347_s24 }
  0xb2   :  { %p1354_p13 = por %p1353_p12, %p1352_p11 }
  0xb4   :  { %p1355_p0 = pnand %p1354_p13, %p1348_p10 }
  0xb6   :  { %1358 = shalt.err (!%p1355_p0)  }
  0xb7   :  { %164 = dma.hbm_to_vmem [thread:$0]  %s828_s7, 16, %s1777_s27, [#allocation4] }
  0xb8   :  { %s831_s28 = scalar_lea.hbm %s830_s10, 128  ;;  %s1637_s15 = smov [#allocation3 + $0x3]  }
  0xb9   :  { %s175_s20 = sshll.u32 %s1637_s15, 4  ;;  %s994_s16 = sld [smem:[#allocation6 + $0x4]]  ;;  %s176_s20 = int_to_ptr.vmem [resolvable:$true] %s175_s20 }
  0xba   :  { %s1382_s4 = scalar_lea.hbm %s830_s10, 144  ;;  %p1363_p2 = scmp.lt.s32.totalorder %s831_s28, %s1940_s2 }
  0xbb   :  { %p1361_p1 = scmp.ne.s32.totalorder %s831_s28, %s1382_s4  ;;  %p1364_p3 = scmp.lt.s32.totalorder %s1715_s1, %s1382_s4 }
  0xbd   :  { %p1365_p4 = por %p1364_p3, %p1363_p2 }
  0xbf   :  { %p1366_p5 = pnand %p1365_p4, %p1361_p1 }
  0xc1   :  { %1369 = shalt.err (!%p1366_p5)  }
  0xc2   :  { %s1370_s29 = scalar_lea.vmem %s176_s20, 16  ;;  %p1375_p7 = scmp.lt.s32.totalorder %s176_s20, %s1700_s17 }
  0xc3   :  { %p1371_p6 = scmp.ne.s32.totalorder %s176_s20, %s1370_s29  ;;  %p1376_p8 = scmp.lt.s32.totalorder %s1741_s22, %s1370_s29 }
  0xc5   :  { %p1377_p9 = por %p1376_p8, %p1375_p7 }
  0xc7   :  { %p1378_p10 = pnand %p1377_p9, %p1371_p6 }
  0xc9   :  { %1381 = shalt.err (!%p1378_p10)  }
  0xca   :  { %178 = dma.hbm_to_vmem [thread:$0]  %s831_s28, 16, %s176_s20, [#allocation4 + $0x1] }
  0xcb   :  { %s1638_s27 = smov [#allocation2 + $0x4]   ;;  %s1825_s25 = sld [smem:[#allocation7 + $0x4]] }
  0xcc   :  { %s193_s19 = sshll.u32 %s1638_s27, 4  ;;  %s1639_s23 = smov [#allocation3 + $0x4]   ;;  %s194_s19 = int_to_ptr.vmem [resolvable:$true] %s193_s19 }
  0xcd   :  { %s207_s0 = sshll.u32 %s1639_s23, 4  ;;  %s998_s30 = sld [smem:[#allocation6 + $0x5]]  ;;  %s1827_s0 = int_to_ptr.vmem [resolvable:$true] %s207_s0 }
  0xce   :  { %s996_s7 = sshll.u32 %s994_s16, 4  ;;  %s1640_s12 = smov [#allocation2 + $0x5]  }
  0xcf   :  { %s833_s10 = scalar_lea.hbm %s1940_s2, %s996_s7  ;;  %s225_s13 = sshll.u32 %s1640_s12, 4  ;;  %s1839_s13 = int_to_ptr.vmem [resolvable:$true] %s225_s13 }
  0xd0   :  { %s834_s11 = scalar_lea.hbm %s833_s10, 128  ;;  %s1405_s24 = scalar_lea.hbm %s833_s10, 144 }
  0xd1   :  { %p1384_p11 = scmp.ne.s32.totalorder %s834_s11, %s1405_s24  ;;  %p1386_p12 = scmp.lt.s32.totalorder %s834_s11, %s1940_s2 }
  0xd2   :  { %p1387_p13 = scmp.lt.s32.totalorder %s1715_s1, %s1405_s24 }
  0xd4   :  { %p1388_p0 = por %p1387_p13, %p1386_p12 }
  0xd6   :  { %p1389_p1 = pnand %p1388_p0, %p1384_p11 }
  0xd8   :  { %1392 = shalt.err (!%p1389_p1)  }
  0xd9   :  { %s1393_s20 = scalar_lea.vmem %s194_s19, 16  ;;  %p1398_p3 = scmp.lt.s32.totalorder %s194_s19, %s1694_s14 }
  0xda   :  { %p1394_p2 = scmp.ne.s32.totalorder %s194_s19, %s1393_s20  ;;  %p1399_p4 = scmp.lt.s32.totalorder %s1724_s9, %s1393_s20 }
  0xdc   :  { %p1400_p5 = por %p1399_p4, %p1398_p3 }
  0xde   :  { %p1401_p6 = pnand %p1400_p5, %p1394_p2 }
  0xe0   :  { %1404 = shalt.err (!%p1401_p6)  }
  0xe1   :  { %196 = dma.hbm_to_vmem [thread:$0]  %s834_s11, 16, %s194_s19, [#allocation4] }
  0xe2   :  { %s997_s16 = sshll.u32 %s1825_s25, 4  ;;  %s1000_s29 = sshll.u32 %s998_s30, 4 }
  0xe3   :  { %s836_s26 = scalar_lea.hbm %s1940_s2, %s997_s16  ;;  %s839_s8 = scalar_lea.hbm %s1940_s2, %s1000_s29 }
  0xe4   :  { %s837_s27 = scalar_lea.hbm %s836_s26, 128  ;;  %s1428_s21 = scalar_lea.hbm %s836_s26, 144 }
  0xe5   :  { %p1407_p7 = scmp.ne.s32.totalorder %s837_s27, %s1428_s21  ;;  %p1409_p8 = scmp.lt.s32.totalorder %s837_s27, %s1940_s2 }
  0xe6   :  { %p1410_p9 = scmp.lt.s32.totalorder %s1715_s1, %s1428_s21 }
  0xe8   :  { %p1411_p10 = por %p1410_p9, %p1409_p8 }
  0xea   :  { %p1412_p11 = pnand %p1411_p10, %p1407_p7 }
  0xec   :  { %1415 = shalt.err (!%p1412_p11)  }
  0xed   :  { %s1416_s19 = scalar_lea.vmem %s1827_s0, 16  ;;  %p1421_p13 = scmp.lt.s32.totalorder %s1827_s0, %s1700_s17 }
  0xee   :  { %p1417_p12 = scmp.ne.s32.totalorder %s1827_s0, %s1416_s19  ;;  %p1422_p0 = scmp.lt.s32.totalorder %s1741_s22, %s1416_s19 }
  0xf0   :  { %p1423_p1 = por %p1422_p0, %p1421_p13 }
  0xf2   :  { %p1424_p2 = pnand %p1423_p1, %p1417_p12 }
  0xf4   :  { %1427 = shalt.err (!%p1424_p2)  }
  0xf5   :  { %210 = dma.hbm_to_vmem [thread:$0]  %s837_s27, 16, %s1827_s0, [#allocation4 + $0x1] }
  0xf6   :  { %s840_s25 = scalar_lea.hbm %s839_s8, 128  ;;  %s999_s30 = sld [smem:[#allocation7 + $0x5]] }
  0xf7   :  { %s1451_s11 = scalar_lea.hbm %s839_s8, 144  ;;  %p1432_p4 = scmp.lt.s32.totalorder %s840_s25, %s1940_s2 }
  0xf8   :  { %p1430_p3 = scmp.ne.s32.totalorder %s840_s25, %s1451_s11  ;;  %p1433_p5 = scmp.lt.s32.totalorder %s1715_s1, %s1451_s11 }
  0xfa   :  { %p1434_p6 = por %p1433_p5, %p1432_p4 }
  0xfc   :  { %p1435_p7 = pnand %p1434_p6, %p1430_p3 }
  0xfe   :  { %1438 = shalt.err (!%p1435_p7)  }
  0xff   :  { %s1439_s15 = scalar_lea.vmem %s1839_s13, 16  ;;  %p1444_p9 = scmp.lt.s32.totalorder %s1839_s13, %s1694_s14 }
 0x100   :  { %p1440_p8 = scmp.ne.s32.totalorder %s1839_s13, %s1439_s15  ;;  %p1445_p10 = scmp.lt.s32.totalorder %s1724_s9, %s1439_s15 }
 0x102   :  { %p1446_p11 = por %p1445_p10, %p1444_p9 }
 0x104   :  { %p1447_p12 = pnand %p1446_p11, %p1440_p8 }
 0x106   :  { %1450 = shalt.err (!%p1447_p12)  }
 0x107   :  { %228 = dma.hbm_to_vmem [thread:$0]  %s840_s25, 16, %s1839_s13, [#allocation4] }
 0x108   :  { %s1867_s0 = sld [smem:[#allocation6 + $0x6]]  ;;  %s1641_s20 = smov [#allocation3 + $0x5]  }
 0x109   :  { %s239_s16 = sshll.u32 %s1641_s20, 4  ;;  %s1642_s4 = smov [#allocation2 + $0x6]   ;;  %s240_s16 = int_to_ptr.vmem [resolvable:$true] %s239_s16 }
 0x10a   :  { %s257_s18 = sshll.u32 %s1642_s4, 4  ;;  %s1871_s26 = sld [smem:[#allocation7 + $0x6]]  ;;  %s1869_s18 = int_to_ptr.vmem [resolvable:$true] %s257_s18 }
 0x10b   :  { %s1001_s29 = sshll.u32 %s999_s30, 4  ;;  %s1643_s8 = smov [#allocation3 + $0x6]  }
 0x10c   :  { %s842_s7 = scalar_lea.hbm %s1940_s2, %s1001_s29  ;;  %s271_s13 = sshll.u32 %s1643_s8, 4  ;;  %s1886_s13 = int_to_ptr.vmem [resolvable:$true] %s271_s13 }
 0x10d   :  { %s843_s21 = scalar_lea.hbm %s842_s7, 128  ;;  %s1474_s12 = scalar_lea.hbm %s842_s7, 144 }
 0x10e   :  { %s1004_s10 = sshll.u32 %s1867_s0, 4  ;;  %p1453_p13 = scmp.ne.s32.totalorder %s843_s21, %s1474_s12 }
 0x10f   :  { %p1455_p0 = scmp.lt.s32.totalorder %s843_s21, %s1940_s2  ;;  %p1456_p1 = scmp.lt.s32.totalorder %s1715_s1, %s1474_s12 }
 0x111   :  { %p1457_p2 = por %p1456_p1, %p1455_p0 }
 0x113   :  { %p1458_p3 = pnand %p1457_p2, %p1453_p13 }
 0x115   :  { %1461 = shalt.err (!%p1458_p3)  }
 0x116   :  { %s1462_s11 = scalar_lea.vmem %s240_s16, 16  ;;  %p1467_p5 = scmp.lt.s32.totalorder %s240_s16, %s1700_s17 }
 0x117   :  { %p1463_p4 = scmp.ne.s32.totalorder %s240_s16, %s1462_s11  ;;  %p1468_p6 = scmp.lt.s32.totalorder %s1741_s22, %s1462_s11 }
 0x119   :  { %p1469_p7 = por %p1468_p6, %p1467_p5 }
 0x11b   :  { %p1470_p8 = pnand %p1469_p7, %p1463_p4 }
 0x11d   :  { %1473 = shalt.err (!%p1470_p8)  }
 0x11e   :  { %242 = dma.hbm_to_vmem [thread:$0]  %s843_s21, 16, %s240_s16, [#allocation4 + $0x1] }
 0x11f   :  { %s845_s28 = scalar_lea.hbm %s1940_s2, %s1004_s10  ;;  %s1005_s0 = sshll.u32 %s1871_s26, 4 }
 0x120   :  { %s846_s15 = scalar_lea.hbm %s845_s28, 128  ;;  %s1497_s20 = scalar_lea.hbm %s845_s28, 144 }
 0x121   :  { %p1476_p9 = scmp.ne.s32.totalorder %s846_s15, %s1497_s20  ;;  %p1478_p10 = scmp.lt.s32.totalorder %s846_s15, %s1940_s2 }
 0x122   :  { %p1479_p11 = scmp.lt.s32.totalorder %s1715_s1, %s1497_s20 }
 0x124   :  { %p1480_p12 = por %p1479_p11, %p1478_p10 }
 0x126   :  { %p1481_p13 = pnand %p1480_p12, %p1476_p9 }
 0x128   :  { %1484 = shalt.err (!%p1481_p13)  }
 0x129   :  { %s1485_s16 = scalar_lea.vmem %s1869_s18, 16  ;;  %p1490_p1 = scmp.lt.s32.totalorder %s1869_s18, %s1694_s14 }
 0x12a   :  { %p1486_p0 = scmp.ne.s32.totalorder %s1869_s18, %s1485_s16  ;;  %p1491_p2 = scmp.lt.s32.totalorder %s1724_s9, %s1485_s16 }
 0x12c   :  { %p1492_p3 = por %p1491_p2, %p1490_p1 }
 0x12e   :  { %p1493_p4 = pnand %p1492_p3, %p1486_p0 }
 0x130   :  { %1496 = shalt.err (!%p1493_p4)  }
 0x131   :  { %260 = dma.hbm_to_vmem [thread:$0]  %s846_s15, 16, %s1869_s18, [#allocation4] }
 0x132   :  { %s848_s23 = scalar_lea.hbm %s1940_s2, %s1005_s0  ;;  %s1006_s7 = sld [smem:[#allocation6 + $0x7]] }
 0x133   :  { %s849_s8 = scalar_lea.hbm %s848_s23, 128  ;;  %s1520_s21 = scalar_lea.hbm %s848_s23, 144 }
 0x134   :  { %p1499_p5 = scmp.ne.s32.totalorder %s849_s8, %s1520_s21  ;;  %p1501_p6 = scmp.lt.s32.totalorder %s849_s8, %s1940_s2 }
 0x135   :  { %p1502_p7 = scmp.lt.s32.totalorder %s1715_s1, %s1520_s21 }
 0x137   :  { %p1503_p8 = por %p1502_p7, %p1501_p6 }
 0x139   :  { %p1504_p9 = pnand %p1503_p8, %p1499_p5 }
 0x13b   :  { %1507 = shalt.err (!%p1504_p9)  }
 0x13c   :  { %s1508_s18 = scalar_lea.vmem %s1886_s13, 16  ;;  %p1513_p11 = scmp.lt.s32.totalorder %s1886_s13, %s1700_s17 }
 0x13d   :  { %p1509_p10 = scmp.ne.s32.totalorder %s1886_s13, %s1508_s18  ;;  %p1514_p12 = scmp.lt.s32.totalorder %s1741_s22, %s1508_s18 }
 0x13f   :  { %p1515_p13 = por %p1514_p12, %p1513_p11 }
 0x141   :  { %p1516_p0 = pnand %p1515_p13, %p1509_p10 }
 0x143   :  { %1519 = shalt.err (!%p1516_p0)  }
 0x144   :  { %274 = dma.hbm_to_vmem [thread:$0]  %s849_s8, 16, %s1886_s13, [#allocation4 + $0x1] }
 0x145   :  { %s1644_s19 = smov [#allocation2 + $0x7]   ;;  %s1007_s11 = sld [smem:[#allocation7 + $0x7]] }
 0x146   :  { %s289_s25 = sshll.u32 %s1644_s19, 4  ;;  %s1008_s30 = sshll.u32 %s1006_s7, 4  ;;  %s290_s25 = int_to_ptr.vmem [resolvable:$true] %s289_s25 }
 0x147   :  { %s851_s15 = scalar_lea.hbm %s1940_s2, %s1008_s30  ;;  %s1645_s0 = smov [#allocation3 + $0x7]  }
 0x148   :  { %s303_s20 = sshll.u32 %s1645_s0, 4  ;;  %s852_s4 = scalar_lea.hbm %s851_s15, 128  ;;  %s304_s20 = int_to_ptr.vmem [resolvable:$true] %s303_s20 }
 0x149   :  { %s1543_s29 = scalar_lea.hbm %s851_s15, 144  ;;  %p1524_p2 = scmp.lt.s32.totalorder %s852_s4, %s1940_s2 }
 0x14a   :  { %p1522_p1 = scmp.ne.s32.totalorder %s852_s4, %s1543_s29  ;;  %p1525_p3 = scmp.lt.s32.totalorder %s1715_s1, %s1543_s29 }
 0x14c   :  { %p1526_p4 = por %p1525_p3, %p1524_p2 }
 0x14e   :  { %p1527_p5 = pnand %p1526_p4, %p1522_p1 }
 0x150   :  { %1530 = shalt.err (!%p1527_p5)  }
 0x151   :  { %s1531_s13 = scalar_lea.vmem %s290_s25, 16  ;;  %p1536_p7 = scmp.lt.s32.totalorder %s290_s25, %s1694_s14 }
 0x152   :  { %p1532_p6 = scmp.ne.s32.totalorder %s290_s25, %s1531_s13  ;;  %p1537_p8 = scmp.lt.s32.totalorder %s1724_s9, %s1531_s13 }
 0x154   :  { %p1538_p9 = por %p1537_p8, %p1536_p7 }
 0x156   :  { %p1539_p10 = pnand %p1538_p9, %p1532_p6 }
 0x158   :  { %1542 = shalt.err (!%p1539_p10)  }
 0x159   :  { %292 = dma.hbm_to_vmem [thread:$0]  %s852_s4, 16, %s290_s25, [#allocation4] }
 0x15a   :  { %s1009_s27 = sshll.u32 %s1007_s11, 4 }
 0x15b   :  { %s854_s8 = scalar_lea.hbm %s1940_s2, %s1009_s27 }
 0x15c   :  { %s855_s21 = scalar_lea.hbm %s854_s8, 128  ;;  %s1566_s10 = scalar_lea.hbm %s854_s8, 144 }
 0x15d   :  { %p1545_p11 = scmp.ne.s32.totalorder %s855_s21, %s1566_s10  ;;  %p1547_p12 = scmp.lt.s32.totalorder %s855_s21, %s1940_s2 }
 0x15e   :  { %p1548_p13 = scmp.lt.s32.totalorder %s1715_s1, %s1566_s10 }
 0x160   :  { %p1549_p0 = por %p1548_p13, %p1547_p12 }
 0x162   :  { %p1550_p1 = pnand %p1549_p0, %p1545_p11 }
 0x164   :  { %1553 = shalt.err (!%p1550_p1)  }
 0x165   :  { %s1554_s14 = scalar_lea.vmem %s304_s20, 16  ;;  %p1559_p3 = scmp.lt.s32.totalorder %s304_s20, %s1700_s17 }
 0x166   :  { %p1555_p2 = scmp.ne.s32.totalorder %s304_s20, %s1554_s14  ;;  %p1560_p4 = scmp.lt.s32.totalorder %s1741_s22, %s1554_s14 }
 0x168   :  { %p1561_p5 = por %p1560_p4, %p1559_p3 }
 0x16a   :  { %p1562_p6 = pnand %p1561_p5, %p1555_p2 }
 0x16c   :  { %1565 = shalt.err (!%p1562_p6)  }
 0x16d   :  { %306 = dma.hbm_to_vmem [thread:$0]  %s855_s21, 16, %s304_s20, [#allocation4 + $0x1] }
 0x16e   :  { %1591 = dma.done.wait [#allocation4], 16 }
 0x16f   :  { %1592 = vsyncadd [#allocation4], 4294967280 }
 0x170   :  { %1593 = dma.done.wait [#allocation4 + $0x1], 16 }
 0x171   :  { %1594 = vsyncadd [#allocation4 + $0x1], 4294967280 }
 0x172   :  { %1595 = dma.done.wait [#allocation4], 16 }
 0x173   :  { %1596 = vsyncadd [#allocation4], 4294967280 }
 0x174   :  { %1597 = dma.done.wait [#allocation4 + $0x1], 16 }
 0x175   :  { %1598 = vsyncadd [#allocation4 + $0x1], 4294967280 }
 0x176   :  { %1599 = dma.done.wait [#allocation4], 16 }
 0x177   :  { %1600 = vsyncadd [#allocation4], 4294967280 }
 0x178   :  { %1601 = dma.done.wait [#allocation4 + $0x1], 16 }
 0x179   :  { %1602 = vsyncadd [#allocation4 + $0x1], 4294967280 }
 0x17a   :  { %1603 = dma.done.wait [#allocation4], 16 }
 0x17b   :  { %1604 = vsyncadd [#allocation4], 4294967280 }
 0x17c   :  { %1605 = dma.done.wait [#allocation4 + $0x1], 16 }
 0x17d   :  { %1606 = vsyncadd [#allocation4 + $0x1], 4294967280 }
 0x17e   :  { %1607 = dma.done.wait [#allocation4], 16 }
 0x17f   :  { %1608 = vsyncadd [#allocation4], 4294967280 }
 0x180   :  { %1609 = dma.done.wait [#allocation4 + $0x1], 16 }
 0x181   :  { %1610 = vsyncadd [#allocation4 + $0x1], 4294967280 }
 0x182   :  { %1611 = dma.done.wait [#allocation4], 16 }
 0x183   :  { %1612 = vsyncadd [#allocation4], 4294967280 }
 0x184   :  { %1613 = dma.done.wait [#allocation4 + $0x1], 16 }
 0x185   :  { %1614 = vsyncadd [#allocation4 + $0x1], 4294967280 }
 0x186   :  { %1615 = dma.done.wait [#allocation4], 16 }
 0x187   :  { %1616 = vsyncadd [#allocation4], 4294967280 }
 0x188   :  { %1617 = dma.done.wait [#allocation4 + $0x1], 16 }
 0x189   :  { %1618 = vsyncadd [#allocation4 + $0x1], 4294967280 }
 0x18a   :  { %1619 = dma.done.wait [#allocation4], 16 }
 0x18b   :  { %1620 = vsyncadd [#allocation4], 4294967280 }
 0x18c   :  { %1621 = dma.done.wait [#allocation4 + $0x1], 16 }
 0x18d   :  { %1622 = vsyncadd [#allocation4 + $0x1], 4294967280  ;;  %v1646_v0 = vmov 0   ;;  %v1647_v1 = vmov 0.0   ;;  %v666_v2 = vld [vmem:[%s1941_s3] sm:$0xff]  ;;  %v689_v3 = vld [vmem:[#allocation8 + $0x78] sm:$0xff] }
 0x18e   :  { %1156 = vset.pattern.permute.xlu0 %v1646_v0  ;;  %1096 = vmatprep.subr.mxu0 %v1647_v1  ;;  %v688_v4 = vld [vmem:[#allocation8 + $0x70] sm:$0xff]  ;;  %vm1648_vm0 = vmmov 0   ;;  %v687_v5 = vld [vmem:[#allocation8 + $0x68] sm:$0xff]  ;;  %v686_v6 = vld [vmem:[#allocation8 + $0x60] sm:$0xff]  ;;  %s1649_s9 = smov [#allocation11]  }
 0x18f   :  { %1128 = vmatprep.mubr.msk.f32.mxu0 %vm1648_vm0, %v1647_v1  ;;  %669 = vperm.xlu0 %1156, %v666_v2   ;;  %v685_v7 = vld [vmem:[#allocation8 + $0x58] sm:$0xff]  ;;  %v684_v8 = vld [vmem:[#allocation8 + $0x50] sm:$0xff]  ;;  %v683_v9 = vld [vmem:[#allocation8 + $0x48] sm:$0xff]  ;;  %s774_s22 = sshll.u32 %s1649_s9, 4  ;;  %s775_s22 = int_to_ptr.vmem [resolvable:$true] %s774_s22 }
 0x190   :  { %1097 = vmatpush3.msra.mxu0 %v689_v3  ;;  %v682_v10 = vld [vmem:[#allocation8 + $0x40] sm:$0xff]  ;;  %v681_v11 = vld [vmem:[#allocation8 + $0x38] sm:$0xff]  ;;  %v680_v12 = vld [vmem:[#allocation8 + $0x30] sm:$0xff]  ;;  %s1567_s19 = scalar_lea.vmem %s775_s22, 128  ;;  %p1572_p8 = scmp.lt.s32.totalorder %s775_s22, %s775_s22 }
 0x191   :  { %1098 = vmatprep.subr.mxu0 %v1647_v1  ;;  %v679_v13 = vld [vmem:[#allocation8 + $0x28] sm:$0xff]  ;;  %v678_v14 = vld [vmem:[#allocation8 + $0x20] sm:$0xff]  ;;  %v677_v15 = vld [vmem:[#allocation8 + $0x18] sm:$0xff]  ;;  %p1568_p7 = scmp.ne.s32.totalorder %s775_s22, %s1567_s19  ;;  %p1573_p9 = scmp.lt.s32.totalorder %s1567_s19, %s1567_s19 }
 0x192   :  { %1099 = vmatpush3.msra.mxu0 %v688_v4  ;;  %v676_v16 = vld [vmem:[#allocation8 + $0x10] sm:$0xff]  ;;  %v675_v17 = vld [vmem:[#allocation8 + $0x8] sm:$0xff]  ;;  %v674_v18 = vld [vmem:[#allocation8] sm:$0xff] }
 0x193   :  { %1100 = vmatprep.subr.mxu0 %v1647_v1  ;;  %v665_v19 = vld [vmem:[#allocation3] sm:$0xff]  ;;  %v663_v21 = vld [vmem:[#allocation2] sm:$0xff]  ;;  %p1574_p10 = por %p1573_p9, %p1572_p8 }
 0x194   :  { %1101 = vmatpush3.msra.mxu0 %v687_v5  ;;  %v1042_v24 = vld [vmem:[%s1943_s5] ss:$0 sm:$0xff] }
 0x195   :  { %1102 = vmatprep.subr.mxu0 %v1647_v1  ;;  %p1575_p11 = pnand %p1574_p10, %p1568_p7 }
 0x196   :  { %1103 = vmatpush3.msra.mxu0 %v686_v6 }
 0x197   :  { %1104 = vmatprep.subr.mxu0 %v1647_v1 }
 0x198   :  { %1105 = vmatpush3.msra.mxu0 %v685_v7 }
 0x199   :  { %1106 = vmatprep.subr.mxu0 %v1647_v1 }
 0x19a   :  { %1107 = vmatpush3.msra.mxu0 %v684_v8 }
 0x19b   :  { %1108 = vmatprep.subr.mxu0 %v1647_v1 }
 0x19c   :  { %1109 = vmatpush3.msra.mxu0 %v683_v9 }
 0x19d   :  { %1110 = vmatprep.subr.mxu0 %v1647_v1 }
 0x19e   :  { %1111 = vmatpush3.msra.mxu0 %v682_v10 }
 0x19f   :  { %1112 = vmatprep.subr.mxu0 %v1647_v1 }
 0x1a0   :  { %1113 = vmatpush3.msra.mxu0 %v681_v11 }
 0x1a1   :  { %1114 = vmatprep.subr.mxu0 %v1647_v1 }
 0x1a2   :  { %1115 = vmatpush3.msra.mxu0 %v680_v12 }
 0x1a3   :  { %1116 = vmatprep.subr.mxu0 %v1647_v1 }
 0x1a4   :  { %1117 = vmatpush3.msra.mxu0 %v679_v13 }
 0x1a5   :  { %1118 = vmatprep.subr.mxu0 %v1647_v1 }
 0x1a6   :  { %1119 = vmatpush3.msra.mxu0 %v678_v14 }
 0x1a7   :  { %1120 = vmatprep.subr.mxu0 %v1647_v1 }
 0x1a8   :  { %1121 = vmatpush3.msra.mxu0 %v677_v15 }
 0x1a9   :  { %1122 = vmatprep.subr.mxu0 %v1647_v1 }
 0x1aa   :  { %1123 = vmatpush3.msra.mxu0 %v676_v16 }
 0x1ab   :  { %1124 = vmatprep.subr.mxu0 %v1647_v1 }
 0x1ac   :  { %1125 = vmatpush3.msra.mxu0 %v675_v17 }
 0x1ad   :  { %1126 = vmatprep.subr.mxu0 %v1647_v1 }
 0x1ae   :  { %1127 = vmatpush3.msra.mxu0 %v674_v18 }
 0x20a   :  { %v670_v20 = vpop.permute.xlu0 %669 }
 0x20b   :  { %v672_v22 = vmul.f32 %v670_v20, %v665_v19 }
 0x20d   :  { %v673_v23 = vadd.f32 %v672_v22, %v663_v21 }
 0x20f   :  { %1129 = vmatmul.mubr.f32.vlgmr.msra.gmra.mxu0 %v673_v23 }
 0x2cf   :  { %v763_v25 = vpop.f32.mrf.mxu0 }
 0x2d0   :  { %v764_v26 = vadd.f32 %v1042_v24, %v763_v25 }
 0x2d1   :  { %v1130_v27 = vpop.f32.mrf.mxu0 }
 0x2d2   :  { %767 = vst [vmem:[#allocation11] sm:$0xff] %v764_v26 }
 0x2d3   :  { %1578 = shalt.err (!%p1575_p11)
}
 0x2d4   :  { %777 = dma.vmem_to_hbm [thread:$0]  %s775_s22, 128, %s1944_s6, [#allocation10]  }
 0x2d5   :  { %1623 = dma.done.wait [#allocation10], 128  }
 0x2d6   :  { %1624 = vsyncadd [#allocation10], 4294967168 }
 0x2d7   :  { %781 = vsyncpa [#allocation9], 1 }
 0x2d8   :  { %782 = vsyncpa [#allocation10], 1 }
 0x2d9   :  { %783 = vsyncmov [#allocation4] }
 0x2dc   :  { %s784_s5 = vpop.sfrf %783 }
 0x2dd   :  { %p1043_p12 = scmp.ne.s32.totalorder %s784_s5, 0 }
 0x2df   :  { %788 = shalt.err (%p1043_p12)  }
 0x2e0   :  { %790 = vsyncmov [#allocation4 + $0x1] }
 0x2e3   :  { %s791_s30 = vpop.sfrf %790 }
 0x2e4   :  { %p1044_p13 = scmp.ne.s32.totalorder %s791_s30, 0 }
 0x2e6   :  { %795 = shalt.err (%p1044_p13)  }
 0x2e7   :  { %797 = vsyncmov [#allocation4 + $0x2] }
 0x2ea   :  { %s798_s24 = vpop.sfrf %797 }
 0x2eb   :  { %p1045_p0 = scmp.ne.s32.totalorder %s798_s24, 0 }
 0x2ed   :  { %802 = shalt.err (%p1045_p0)  }
 0x2ee   :  { %804 = vsyncmov [#allocation4 + $0x3] }
 0x2f1   :  { %s805_s28 = vpop.sfrf %804 }
 0x2f2   :  { %p1046_p1 = scmp.ne.s32.totalorder %s805_s28, 0 }
 0x2f4   :  { %809 = shalt.err (%p1046_p1)  }

</bundles_post_ra>
